<compile_context>
chip_gen: v7x
topology: tpu7x:2x2x1
jax: 0.10.0
libtpu: 0.0.40
codegen_flags: <defaults>
</compile_context>

<pallas_src>
import functools

import jax
import jax.numpy as jnp
from jax.experimental import pallas as pl
from jax.experimental.pallas import tpu as pltpu


def _round_up(a, b):
    return ((a + b - 1) // b) * b


# ---------------------------------------------------------------------------
# Fused kernel, gridded over edge blocks (axis "arbitrary"):
#   step 0      : kqvs = x @ [Wk|Wq|Wv|Wskip] + [bk|bq|bv|bias]  -> VMEM scratch
#                 out  = skip + bias                              -> accumulator init
#   every step  : one stacked one-hot gather matmul ([dst|src] rows), gated message
#                 on the VPU/EUP, dot_general scatter-add into the resident output.
#   Padded edges carry index -1 -> all-zero one-hot rows -> zero contribution.
# ---------------------------------------------------------------------------
def fused_resgated_kernel(idx_ref, x_ref, w_ref, b_ref, out_ref, kqvs_ref, *, cout):
    te2 = idx_ref.shape[0]          # 2 * TE  (first TE rows = dst, last TE = src)
    te = te2 // 2
    n_pad = kqvs_ref.shape[0]

    @pl.when(pl.program_id(0) == 0)
    def _():
        kqvs = (jnp.dot(x_ref[...], w_ref[...],
                        preferred_element_type=jnp.float32) + b_ref[...])
        kqvs_ref[...] = kqvs                                   # [N_pad, C4]
        out_ref[...] = kqvs[:, 3 * cout:4 * cout]              # skip + bias

    # Build the stacked one-hot operator for this edge block on the VPU.
    ids = idx_ref[...]                                         # [2TE, 1] int32
    node_ids = jax.lax.broadcasted_iota(jnp.int32, (te2, n_pad), 1)
    oh = (ids == node_ids).astype(jnp.float32)                 # [2TE, N_pad]

    # One fused gather matmul: rows 0..TE-1 gather dst features, TE.. gather src.
    gathered = jnp.dot(oh, kqvs_ref[...],
                       preferred_element_type=jnp.float32)     # [2TE, C4]
    k_i = gathered[:te, 0 * cout:1 * cout]                     # k[dst]
    q_j = gathered[te:, 1 * cout:2 * cout]                     # q[src]
    v_j = gathered[te:, 2 * cout:3 * cout]                     # v[src]

    msg = jax.nn.sigmoid(k_i + q_j) * v_j                      # [TE, Cout]

    # Scatter-add over destinations: contract the edge dim of oh_dst with msg.
    oh_dst = oh[:te]                                           # [TE, N_pad]
    agg = jax.lax.dot_general(oh_dst, msg, (((0,), (0,)), ((), ())),
                              preferred_element_type=jnp.float32)  # [N_pad, Cout]
    out_ref[...] += agg


def res_gated_gcn_conv(x, edge_index, params, *, edge_block=256):
    """x: [N, Cin] f32; edge_index: [2, E] int32 (row 0 = src j, row 1 = dst i)."""
    N, Cin = x.shape
    E = edge_index.shape[1]
    Cout = params["wk"].shape[1]
    C4 = _round_up(4 * Cout, 128)             # packed lane-dense feature width

    # ---- packed, lane-dense parameters: [Wk|Wq|Wv|Wskip] padded once ----------
    wall = jnp.concatenate([params["wk"], params["wq"],
                            params["wv"], params["wskip"]], axis=1)   # [Cin, 4*Cout]
    ball = jnp.concatenate([params["bk"], params["bq"],
                            params["bv"], params["bias"]], axis=1)    # [1, 4*Cout]
    wall = jnp.pad(wall, ((0, 0), (0, C4 - 4 * Cout)))
    ball = jnp.pad(ball, ((0, 0), (0, C4 - 4 * Cout)))

    # ---- pad nodes / edges -----------------------------------------------------
    N_pad = _round_up(N, 8)
    x_p = jnp.pad(x, ((0, N_pad - N), (0, 0)))

    TE = min(edge_block, _round_up(E, 8))
    E_pad = _round_up(E, TE)
    nb = E_pad // TE
    pad_e = E_pad - E
    src = jnp.pad(edge_index[0], (0, pad_e), constant_values=-1)
    dst = jnp.pad(edge_index[1], (0, pad_e), constant_values=-1)
    # Per edge block b, lay out [dst_b (TE) ; src_b (TE)] so the kernel does one
    # stacked one-hot / one gather matmul per block.
    idx = jnp.concatenate([dst.reshape(nb, TE), src.reshape(nb, TE)],
                          axis=1).reshape(nb * 2 * TE, 1)

    out_pad = pl.pallas_call(
        functools.partial(fused_resgated_kernel, cout=Cout),
        out_shape=jax.ShapeDtypeStruct((N_pad, Cout), jnp.float32),
        grid_spec=pltpu.PrefetchScalarGridSpec(
            num_scalar_prefetch=0,
            grid=(nb,),
            in_specs=[pl.BlockSpec((2 * TE, 1), lambda e: (e, 0)),    # [dst|src] ids
                      pl.BlockSpec((N_pad, Cin), lambda e: (0, 0)),   # x (constant)
                      pl.BlockSpec((Cin, C4), lambda e: (0, 0)),      # packed W
                      pl.BlockSpec((1, C4), lambda e: (0, 0))],       # packed b
            out_specs=pl.BlockSpec((N_pad, Cout), lambda e: (0, 0)),  # accumulator
            scratch_shapes=[pltpu.VMEM((N_pad, C4), jnp.float32)]),   # packed kqvs
        compiler_params=pltpu.CompilerParams(
            dimension_semantics=("arbitrary",),
            vmem_limit_bytes=48 * 1024 * 1024),
    )(idx, x_p, wall, ball)

    return out_pad[:N]


def reference(x, edge_index, params):
    """Pure-JAX reference matching PyG ResGatedGraphConv semantics."""
    k = x @ params["wk"] + params["bk"]
    q = x @ params["wq"] + params["bq"]
    v = x @ params["wv"] + params["bv"]
    src, dst = edge_index[0], edge_index[1]
    msg = jax.nn.sigmoid(k[dst] + q[src]) * v[src]
    agg = jax.ops.segment_sum(msg, dst, num_segments=x.shape[0])
    return agg + x @ params["wskip"] + params["bias"]


def init_params(key, in_channels, out_channels):
    ks = jax.random.split(key, 6)
    scale = 1.0 / jnp.sqrt(in_channels)
    def w(k):
        return jax.random.uniform(k, (in_channels, out_channels),
                                  jnp.float32, -scale, scale)
    def b(k):
        return jax.random.uniform(k, (1, out_channels), jnp.float32, -scale, scale)
    return {
        "wk": w(ks[0]), "bk": b(ks[1]),
        "wq": w(ks[2]), "bq": b(ks[3]),
        "wv": w(ks[4]), "bv": b(ks[5]),
        # lin_skip has bias=False in PyG; the module-level bias param is separate.
        "wskip": w(jax.random.fold_in(key, 100)),
        "bias": b(jax.random.fold_in(key, 200)),
    }


if __name__ == "__main__":
    key = jax.random.PRNGKey(0)
    N, E = 64, 600            # nodes, edges (E_pad=768 -> 3 edge-block grid steps)
    Cin, Cout = 32, 16        # in_channels, out_channels

    kx, ke, kp = jax.random.split(key, 3)
    x = jax.random.normal(kx, (N, Cin), jnp.float32)
    edge_index = jax.random.randint(ke, (2, E), 0, N, dtype=jnp.int32)
    params = init_params(kp, Cin, Cout)

    out = res_gated_gcn_conv(x, edge_index, params)
    out = jax.block_until_ready(out)

    ref = reference(x, edge_index, params)
    assert out.shape == ref.shape
    assert jnp.allclose(out, ref, atol=5e-4, rtol=5e-4), "mismatch vs reference"

    print("KERNEL_OK")
</pallas_src>

<mosaic_0001>
module attributes {stable_mosaic.version = 11 : i64} {
  func.func @fused_resgated_kernel(%arg0: i32, %arg1: memref<512x1xi32, #tpu.memory_space<vmem>>, %arg2: memref<64x32xf32, #tpu.memory_space<vmem>>, %arg3: memref<32x128xf32, #tpu.memory_space<vmem>>, %arg4: memref<1x128xf32, #tpu.memory_space<vmem>>, %arg5: memref<64x16xf32, #tpu.memory_space<vmem>>, %arg6: memref<64x128xf32, #tpu.memory_space<vmem>>) attributes {dimension_semantics = [#tpu.dimension_semantics<arbitrary>], iteration_bounds = array<i64: 3>, scalar_prefetch = 0 : i64, scratch_operands = 1 : i64, tpu.core_type = #tpu.core_type<tc>, window_params = [{transform_indices = @transform_0, window_bounds = array<i64: 512, 1>}, {pipeline_mode = #tpu.pipeline_mode<synchronous>, transform_indices = @transform_1, window_bounds = array<i64: 64, 32>}, {pipeline_mode = #tpu.pipeline_mode<synchronous>, transform_indices = @transform_2, window_bounds = array<i64: 32, 128>}, {pipeline_mode = #tpu.pipeline_mode<synchronous>, transform_indices = @transform_3, window_bounds = array<i64: 1, 128>}, {pipeline_mode = #tpu.pipeline_mode<synchronous>, transform_indices = @transform_4, window_bounds = array<i64: 64, 16>}]} {
    %c0_i32 = arith.constant 0 : i32
    %0 = arith.cmpi eq, %arg0, %c0_i32 : i32
    %1 = arith.extui %0 : i1 to i32
    %c0_i32_0 = arith.constant 0 : i32
    %2 = arith.cmpi ne, %1, %c0_i32_0 : i32
    scf.if %2 {
      %c0_10 = arith.constant 0 : index
      %c0_11 = arith.constant 0 : index
      %26 = vector.load %arg2[%c0_10, %c0_11] : memref<64x32xf32, #tpu.memory_space<vmem>>, vector<64x32xf32>
      %c0_12 = arith.constant 0 : index
      %c0_13 = arith.constant 0 : index
      %27 = vector.load %arg3[%c0_12, %c0_13] : memref<32x128xf32, #tpu.memory_space<vmem>>, vector<32x128xf32>
      %cst_14 = arith.constant dense<0.000000e+00> : vector<64x128xf32>
      %28 = tpu.matmul %26, %27, %cst_14 {dimension_numbers = #tpu.dot_dimension_numbers<[1], [0], [0], [1], [0, 0, 1, 1], [], []>} : vector<64x32xf32>, vector<32x128xf32>, vector<64x128xf32> -> vector<64x128xf32>
      %c0_15 = arith.constant 0 : index
      %c0_16 = arith.constant 0 : index
      %29 = vector.load %arg4[%c0_15, %c0_16] : memref<1x128xf32, #tpu.memory_space<vmem>>, vector<1x128xf32>
      %30 = vector.broadcast %29 : vector<1x128xf32> to vector<64x128xf32>
      %31 = arith.addf %28, %30 : vector<64x128xf32>
      %c0_17 = arith.constant 0 : index
      %c0_18 = arith.constant 0 : index
      %32 = vector.load %arg6[%c0_17, %c0_18] : memref<64x128xf32, #tpu.memory_space<vmem>>, vector<64x128xf32>
      tpu.vector_store %arg6[%c0_17, %c0_18], %31 {strides = array<i32>} : memref<64x128xf32, #tpu.memory_space<vmem>>, vector<64x128xf32>,
      %33 = vector.extract_strided_slice %31 {offsets = [0, 48], sizes = [64, 16], strides = [1, 1]} : vector<64x128xf32> to vector<64x16xf32>
      %c0_19 = arith.constant 0 : index
      %c0_20 = arith.constant 0 : index
      %34 = vector.load %arg5[%c0_19, %c0_20] : memref<64x16xf32, #tpu.memory_space<vmem>>, vector<64x16xf32>
      tpu.vector_store %arg5[%c0_19, %c0_20], %33 {strides = array<i32>} : memref<64x16xf32, #tpu.memory_space<vmem>>, vector<64x16xf32>,
    } else {
    }
    %c0 = arith.constant 0 : index
    %c0_1 = arith.constant 0 : index
    %3 = vector.load %arg1[%c0, %c0_1] : memref<512x1xi32, #tpu.memory_space<vmem>>, vector<512x1xi32>
    %4 = tpu.iota {dimensions = array<i32: 1>} : vector<512x64xi32>
    %5 = vector.broadcast %3 : vector<512x1xi32> to vector<512x64xi32>
    %6 = arith.cmpi eq, %5, %4 : vector<512x64xi32>
    %7 = arith.extui %6 : vector<512x64xi1> to vector<512x64xi32>
    %8 = arith.sitofp %7 : vector<512x64xi32> to vector<512x64xf32>
    %c0_2 = arith.constant 0 : index
    %c0_3 = arith.constant 0 : index
    %9 = vector.load %arg6[%c0_2, %c0_3] : memref<64x128xf32, #tpu.memory_space<vmem>>, vector<64x128xf32>
    %cst = arith.constant dense<0.000000e+00> : vector<512x128xf32>
    %10 = tpu.matmul %8, %9, %cst {dimension_numbers = #tpu.dot_dimension_numbers<[1], [0], [0], [1], [0, 0, 1, 1], [], []>} : vector<512x64xf32>, vector<64x128xf32>, vector<512x128xf32> -> vector<512x128xf32>
    %11 = vector.extract_strided_slice %10 {offsets = [0, 0], sizes = [256, 16], strides = [1, 1]} : vector<512x128xf32> to vector<256x16xf32>
    %12 = vector.extract_strided_slice %10 {offsets = [256, 16], sizes = [256, 16], strides = [1, 1]} : vector<512x128xf32> to vector<256x16xf32>
    %13 = vector.extract_strided_slice %10 {offsets = [256, 32], sizes = [256, 16], strides = [1, 1]} : vector<512x128xf32> to vector<256x16xf32>
    %14 = arith.addf %11, %12 : vector<256x16xf32>
    %15 = arith.negf %14 : vector<256x16xf32>
    %16 = math.exp %15 : vector<256x16xf32>
    %cst_4 = arith.constant 1.000000e+00 : f32
    %17 = vector.broadcast %cst_4 : f32 to vector<256x16xf32>
    %18 = arith.addf %17, %16 : vector<256x16xf32>
    %19 = arith.divf %17, %18 : vector<256x16xf32>
    %20 = arith.mulf %19, %13 : vector<256x16xf32>
    %21 = vector.extract_strided_slice %8 {offsets = [0, 0], sizes = [256, 64], strides = [1, 1]} : vector<512x64xf32> to vector<256x64xf32>
    %cst_5 = arith.constant dense<0.000000e+00> : vector<64x16xf32>
    %22 = tpu.matmul %21, %20, %cst_5 {dimension_numbers = #tpu.dot_dimension_numbers<[0], [0], [1], [1], [0, 1, 1, 1], [], []>} : vector<256x64xf32>, vector<256x16xf32>, vector<64x16xf32> -> vector<64x16xf32>
    %c0_6 = arith.constant 0 : index
    %c0_7 = arith.constant 0 : index
    %23 = vector.load %arg5[%c0_6, %c0_7] : memref<64x16xf32, #tpu.memory_space<vmem>>, vector<64x16xf32>
    %24 = arith.addf %23, %22 : vector<64x16xf32>
    %c0_8 = arith.constant 0 : index
    %c0_9 = arith.constant 0 : index
    %25 = vector.load %arg5[%c0_8, %c0_9] : memref<64x16xf32, #tpu.memory_space<vmem>>, vector<64x16xf32>
    tpu.vector_store %arg5[%c0_8, %c0_9], %24 {strides = array<i32>} : memref<64x16xf32, #tpu.memory_space<vmem>>, vector<64x16xf32>,
    return
  }
  func.func @transform_0(%arg0: i32) -> (i32, i32) {
    %c0_i32 = arith.constant 0 : i32
    %c0_i32_0 = arith.constant 0 : i32
    return %arg0, %c0_i32 : i32, i32
  }
  func.func @transform_1(%arg0: i32) -> (i32, i32) {
    %c0_i32 = arith.constant 0 : i32
    %c0_i32_0 = arith.constant 0 : i32
    %c0_i32_1 = arith.constant 0 : i32
    return %c0_i32, %c0_i32_0 : i32, i32
  }
  func.func @transform_2(%arg0: i32) -> (i32, i32) {
    %c0_i32 = arith.constant 0 : i32
    %c0_i32_0 = arith.constant 0 : i32
    %c0_i32_1 = arith.constant 0 : i32
    return %c0_i32, %c0_i32_0 : i32, i32
  }
  func.func @transform_3(%arg0: i32) -> (i32, i32) {
    %c0_i32 = arith.constant 0 : i32
    %c0_i32_0 = arith.constant 0 : i32
    %c0_i32_1 = arith.constant 0 : i32
    return %c0_i32, %c0_i32_0 : i32, i32
  }
  func.func @transform_4(%arg0: i32) -> (i32, i32) {
    %c0_i32 = arith.constant 0 : i32
    %c0_i32_0 = arith.constant 0 : i32
    %c0_i32_1 = arith.constant 0 : i32
    return %c0_i32, %c0_i32_0 : i32, i32
  }
}

</mosaic_0001>

<bundles_post_ra>
// kernel: tpu_custom_call.1
= control target key start
LH: loop header
LB: loop body
LE: loop exit
PB: predicated region body
PF: predicated region fallthrough
CT: control target
= control target key end

     0   :  { %s2896_s15 = smov 0   ;;  %s3812_s0 = inlined_call_operand.vmem [shape: s32[1536,1], index: 0, kind: input, shape index: {}]   ;;  %s3813_s1 = inlined_call_operand.vmem [shape: f32[64,32], index: 1, kind: input, shape index: {}]   ;;  %s3814_s2 = inlined_call_operand.vmem [shape: f32[32,128], index: 2, kind: input, shape index: {}]   ;;  %s3815_s3 = inlined_call_operand.vmem [shape: f32[1,128], index: 3, kind: input, shape index: {}]   ;;  %s3816_s4 = inlined_call_operand.vmem [shape: f32[64,16], index: 4, kind: output, shape index: {}]  }
   0x1 LB: > { %s2125_s16 = sadd.s32 4294967295, %s2864_s15   ;;  %p2128_p0 = scmp.ge.s32.totalorder %s2864_s15, 1  ;;  %s2864_s15 = sphi %s2896_s15, %s14_s15  }
   0x2   : > { %p158_p1 = scmp.lt.s32.totalorder %s2864_s15, 4 }
   0x4   : > { %p159_p2 = pnand %p2128_p0, %p158_p1 }
   0x6   : > { %162 = sbr.rel (%p159_p2) target bundleno = 1314 (0x522), region = 36 }
   0xd   : > { %s2129_s17 = sshll.u32 %s2125_s16, 6  ;;  %p2131_p4 = scmp.ne.s32.totalorder %s2125_s16, 0 }
   0xe   : > { %p180_p3 = scmp.lt.s32.totalorder %s2129_s17, 191  ;;  %v197_v0 = vld [vmem:[%s3814_s2] sm:$0xff] (!%p2131_p4)  ;;  %v198_v1 = vld [vmem:[%s3814_s2 + $0x8] sm:$0xff] (!%p2131_p4)  ;;  %v199_v2 = vld [vmem:[%s3814_s2 + $0x10] sm:$0xff] (!%p2131_p4)  ;;  %vm208_vm0 = vcmask (!%p2131_p4), 261120   ;;  %s2866_s24 = smov (!%p2131_p4), 80  }
   0xf   : > { %188 = sbr.rel (%p2131_p4) target bundleno = 368 (0x170), region = 40  ;;  %v2575_v3 = vpack.c.bf16 (!%p2131_p4), %v198_v1, %v197_v0  ;;  %v200_v4 = vld [vmem:[%s3814_s2 + $0x18] sm:$0xff] (!%p2131_p4)  ;;  %v189_v5 = vld [vmem:[%s3813_s1] sm:$0xff] (!%p2131_p4)  ;;  %v190_v8 = vld [vmem:[%s3813_s1 + $0x8] sm:$0xff] (!%p2131_p4)  ;;  %vm378_vm1 = vcmask (!%p2131_p4), 130048  }
  0x10   : > { %s3906_s17 = smov (!%p180_p3, %s2129_s17), 191  ;;  %v193_v6 = vld [vmem:[%s3813_s1 + $0x20] sm:$0xff] (!%p2131_p4)  ;;  %v2579_v7 = vpack.c.bf16 (!%p2131_p4), %v200_v4, %v199_v2  ;;  %2451 = vmatprep.mubr.msk.f32.mxu0 (!%p2131_p4), %vm208_vm0, %v189_v5  ;;  %v194_v9 = vld [vmem:[%s3813_s1 + $0x28] sm:$0xff] (!%p2131_p4)  ;;  %v191_v10 = vld [vmem:[%s3813_s1 + $0x10] sm:$0xff] (!%p2131_p4) }
  0x11   : > { %s2130_s18 = sshll.u32 %s3906_s17, 3  ;;  %2457 = vmatprep.mubr.msk.f32.mxu1 (!%p2131_p4), %vm208_vm0, %v193_v6  ;;  %2576 = vmatprep.subr.bf16.mxu0 (!%p2131_p4), %v2575_v3  ;;  %v195_v11 = vld [vmem:[%s3813_s1 + $0x30] sm:$0xff] (!%p2131_p4)  ;;  %v192_v12 = vld [vmem:[%s3813_s1 + $0x18] sm:$0xff] (!%p2131_p4)  ;;  %v2132_v14 = vld [vmem:[%s3815_s3] ss:$0 sm:$0xff] (!%p2131_p4) }
  0x12   : > { %s2907_s21 = scalar_lea.vmem %s3812_s0, %s2130_s18  ;;  %2631 = vmatprep.subr.bf16.mxu1 (!%p2131_p4), %v2575_v3  ;;  %2578 = vmatpush3.bf16.msra.mxu0 (!%p2131_p4), %v2575_v3  ;;  %v196_v13 = vld [vmem:[%s3813_s1 + $0x38] sm:$0xff] (!%p2131_p4) }
  0x13   : > { %2633 = vmatpush3.bf16.msra.mxu1 (!%p2131_p4), %v2575_v3  ;;  %2580 = vmatprep.subr.bf16.mxu0 (!%p2131_p4), %v2579_v7 }
  0x14   : > { %2632 = vmatprep.subr.bf16.mxu1 (!%p2131_p4), %v2579_v7 }
  0x16   : > { %2582 = vmatpush3.bf16.msra.mxu0 %v2579_v7 }
  0x17   : > { %2634 = vmatpush3.bf16.msra.mxu1 %v2579_v7 }
  0x19   : > { %2452 = vmatmul.mubr.msk.f32.vlgmr.msra.gmra.mrb[0].mxu0 %vm208_vm0, %v190_v8 }
  0x1a   : > { %2458 = vmatmul.mubr.msk.f32.vlgmr.msra.gmra.mrb[0].mxu1 %vm208_vm0, %v194_v9  ;;  %2454 = vmatprep.mubr.msk.f32.mxu0 %vm208_vm0, %v191_v10 }
  0x1b   : > { %2460 = vmatprep.mubr.msk.f32.mxu1 %vm208_vm0, %v195_v11 }
  0x1d   : > { %2455 = vmatmul.mubr.msk.f32.gmra.mrb[2].mxu0 %vm208_vm0, %v192_v12 }
  0x1e   : > { %2461 = vmatmul.mubr.msk.f32.gmra.mrb[2].mxu1 %vm208_vm0, %v196_v13 }
  0xec   : > { %v2453_v15 = vpop.f32.mrb[0].mxu0 }
  0xed   : > { %v2459_v16 = vpop.f32.mrb[0].mxu1  ;;  %v305_v17 = vadd.f32 %v2453_v15, %v2132_v14  ;;  %v299_v19 = vpop.f32.mrb[1].mxu0 }
  0xee   : > { %v325_v18 = vadd.f32 %v2459_v16, %v2132_v14  ;;  %v319_v20 = vpop.f32.mrb[1].mxu1  ;;  %v300_v21 = vadd.f32 %v2132_v14, %v299_v19 }
  0xef   : > { %v320_v22 = vadd.f32 %v2132_v14, %v319_v20  ;;  %339 = vst [vmem:[#allocation2 + $0x8] sm:$0xff] %v305_v17  ;;  %356 = vrot.lane.b32.xlu0 %v305_v17, %s2866_s24 }
  0xf0   : > { %343 = vst [vmem:[#allocation2 + $0x28] sm:$0xff] %v325_v18  ;;  %364 = vrot.lane.b32.xlu1 %v325_v18, %s2866_s24  ;;  %338 = vst [vmem:[#allocation2] sm:$0xff] %v300_v21  ;;  %v2456_v23 = vpop.f32.mrb[2].mxu0 }
  0xf1   : > { %342 = vst [vmem:[#allocation2 + $0x20] sm:$0xff] %v320_v22  ;;  %v2462_v24 = vpop.f32.mrb[2].mxu1  ;;  %v315_v25 = vadd.f32 %v2456_v23, %v2132_v14  ;;  %v309_v26 = vpop.f32.mrb[3].mxu0 }
  0xf2   : > { %v335_v27 = vadd.f32 %v2462_v24, %v2132_v14  ;;  %v329_v28 = vpop.f32.mrb[3].mxu1  ;;  %v310_v29 = vadd.f32 %v2132_v14, %v309_v26 }
  0xf3   : > { %v330_v30 = vadd.f32 %v2132_v14, %v329_v28  ;;  %341 = vst [vmem:[#allocation2 + $0x18] sm:$0xff] %v315_v25  ;;  %354 = vrot.lane.b32.xlu0 %v300_v21, %s2866_s24 }
  0xf4   : > { %360 = vrot.lane.b32.xlu1 %v315_v25, %s2866_s24  ;;  %345 = vst [vmem:[#allocation2 + $0x38] sm:$0xff] %v335_v27  ;;  %340 = vst [vmem:[#allocation2 + $0x10] sm:$0xff] %v310_v29 }
  0xf5   : > { %344 = vst [vmem:[#allocation2 + $0x30] sm:$0xff] %v330_v30 }
  0xf7   : > { %362 = vrot.lane.b32.xlu0 %v320_v22, %s2866_s24 }
  0xf8   : > { %358 = vrot.lane.b32.xlu1 %v310_v29, %s2866_s24 }
  0xfb   : > { %366 = vrot.lane.b32.xlu0 %v330_v30, %s2866_s24 }
  0xfc   : > { %368 = vrot.lane.b32.xlu1 %v335_v27, %s2866_s24 }
 0x161   : > { %v357_v32 = vpop.permute.xlu0 %356 }
 0x162   : > { %v365_v31 = vpop.permute.xlu1 %364  ;;  %380 = vst.msk [vmem:[%s3816_s4 + $0x8] sm:$0xff] %vm378_vm1, %v357_v32 }
 0x163   : > { %384 = vst.msk [vmem:[%s3816_s4 + $0x28] sm:$0xff] %vm378_vm1, %v365_v31 }
 0x165   : > { %v355_v34 = vpop.permute.xlu0 %354 }
 0x166   : > { %v361_v33 = vpop.permute.xlu1 %360  ;;  %379 = vst.msk [vmem:[%s3816_s4] sm:$0xff] %vm378_vm1, %v355_v34 }
 0x167   : > { %382 = vst.msk [vmem:[%s3816_s4 + $0x18] sm:$0xff] %vm378_vm1, %v361_v33 }
 0x169   : > { %v363_v36 = vpop.permute.xlu0 %362 }
 0x16a   : > { %v359_v35 = vpop.permute.xlu1 %358  ;;  %383 = vst.msk [vmem:[%s3816_s4 + $0x20] sm:$0xff] %vm378_vm1, %v363_v36 }
 0x16b   : > { %381 = vst.msk [vmem:[%s3816_s4 + $0x10] sm:$0xff] %vm378_vm1, %v359_v35 }
 0x16d   : > { %v367_v38 = vpop.permute.xlu0 %366 }
 0x16e   : > { %v369_v37 = vpop.permute.xlu1 %368  ;;  %385 = vst.msk [vmem:[%s3816_s4 + $0x30] sm:$0xff] %vm378_vm1, %v367_v38 }
 0x16f   : > { %386 = vst.msk [vmem:[%s3816_s4 + $0x38] sm:$0xff] %vm378_vm1, %v369_v37 }
 0x170 PF: > { %v389_v39 = vld [vmem:[%s2907_s21 + $0x10] sm:$0xff]  ;;  %v387_v40 = vld [vmem:[%s2907_s21] sm:$0xff]  ;;  %v2867_v41 = vmov 0   ;;  %v390_v42 = vld [vmem:[%s2907_s21 + $0x18] sm:$0xff]  ;;  %vm845_vm2 = vcmask 523264   ;;  %s2870_s16 = smov 96  }
 0x171   : > { %2657 = vset.pattern.permute.xlu1 %v2867_v41  ;;  %2656 = vset.pattern.permute.xlu0 %v2867_v41  ;;  %v388_v43 = vld [vmem:[%s2907_s21 + $0x8] sm:$0xff]  ;;  %v391_v45 = vld [vmem:[%s2907_s21 + $0x20] sm:$0xff]  ;;  %v394_v46 = vld [vmem:[%s2907_s21 + $0x38] sm:$0xff] }
 0x172   : > { %460 = vperm.xlu1 %2657, %v389_v39   ;;  %454 = vperm.xlu0 %2656, %v387_v40   ;;  %v392_v44 = vld [vmem:[%s2907_s21 + $0x28] sm:$0xff]  ;;  %v393_v47 = vld [vmem:[%s2907_s21 + $0x30] sm:$0xff]  ;;  %v395_v49 = vld [vmem:[%s2907_s21 + $0x40] sm:$0xff] }
 0x173   : > { %v396_v48 = vld [vmem:[%s2907_s21 + $0x48] sm:$0xff]  ;;  %v398_v50 = vld [vmem:[%s2907_s21 + $0x58] sm:$0xff]  ;;  %v397_v51 = vld [vmem:[%s2907_s21 + $0x50] sm:$0xff] }
 0x174   : > { %v837_v52 = vld [vmem:[#allocation2] sm:$0xff]  ;;  %v838_v53 = vld [vmem:[#allocation2 + $0x8] sm:$0xff]  ;;  %v839_v55 = vld [vmem:[#allocation2 + $0x10] sm:$0xff] }
 0x175   : > { %v2583_v54 = vpack.c.bf16 %v838_v53, %v837_v52  ;;  %v840_v56 = vld [vmem:[#allocation2 + $0x18] sm:$0xff]  ;;  %v841_v58 = vld [vmem:[#allocation2 + $0x20] sm:$0xff]  ;;  %v400_v59 = vld [vmem:[%s2907_s21 + $0x68] sm:$0xff] }
 0x176   : > { %463 = vperm.xlu1 %2657, %v390_v42   ;;  %457 = vperm.xlu0 %2656, %v388_v43   ;;  %v2587_v57 = vpack.c.bf16 %v840_v56, %v839_v55  ;;  %v399_v60 = vld [vmem:[%s2907_s21 + $0x60] sm:$0xff]  ;;  %v842_v61 = vld [vmem:[#allocation2 + $0x28] sm:$0xff]  ;;  %v843_v63 = vld [vmem:[#allocation2 + $0x30] sm:$0xff]  ;;  %v2868_v56 = vmov 0.0  }
 0x177   : > { %2584 = vmatprep.subr.bf16.mxu0 %v2583_v54  ;;  %2635 = vmatprep.subr.bf16.mxu1 %v2583_v54  ;;  %v2591_v62 = vpack.c.bf16 %v842_v61, %v841_v58  ;;  %v844_v0 = vld [vmem:[#allocation2 + $0x38] sm:$0xff]  ;;  %v401_v2 = vld [vmem:[%s2907_s21 + $0x70] sm:$0xff]  ;;  %v404_v4 = vld [vmem:[%s2907_s21 + $0x88] sm:$0xff] }
 0x178   : > { %2586 = vmatpush3.bf16.msra.mxu0 %v2583_v54  ;;  %2639 = vmatpush3.bf16.msra.mxu1 %v2583_v54  ;;  %v402_v1 = vld [vmem:[%s2907_s21 + $0x78] sm:$0xff]  ;;  %v2595_v3 = vpack.c.bf16 %v844_v0, %v843_v63  ;;  %v403_v5 = vld [vmem:[%s2907_s21 + $0x80] sm:$0xff]  ;;  %v405_v7 = vld [vmem:[%s2907_s21 + $0x90] sm:$0xff] }
 0x179   : > { %2588 = vmatprep.subr.bf16.mxu0 %v2587_v57  ;;  %2636 = vmatprep.subr.bf16.mxu1 %v2587_v57  ;;  %v406_v6 = vld [vmem:[%s2907_s21 + $0x98] sm:$0xff]  ;;  %v408_v8 = vld [vmem:[%s2907_s21 + $0xa8] sm:$0xff]  ;;  %v407_v9 = vld [vmem:[%s2907_s21 + $0xa0] sm:$0xff] }
 0x17a   : > { %469 = vperm.xlu1 %2657, %v392_v44   ;;  %466 = vperm.xlu0 %2656, %v391_v45   ;;  %v410_v10 = vld [vmem:[%s2907_s21 + $0xb8] sm:$0xff]  ;;  %v409_v11 = vld [vmem:[%s2907_s21 + $0xb0] sm:$0xff]  ;;  %v411_v12 = vld [vmem:[%s2907_s21 + $0xc0] sm:$0xff] }
 0x17b   : > { %v427_v13 = vld [vmem:[%s2907_s21 + $0x140] sm:$0xff]  ;;  %v412_v14 = vld [vmem:[%s2907_s21 + $0xc8] sm:$0xff]  ;;  %v413_v16 = vld [vmem:[%s2907_s21 + $0xd0] sm:$0xff] }
 0x17c   : > { %2590 = vmatpush3.bf16.msra.mxu0 %v2587_v57  ;;  %2640 = vmatpush3.bf16.msra.mxu1 %v2587_v57  ;;  %v428_v15 = vld [vmem:[%s2907_s21 + $0x148] sm:$0xff]  ;;  %v429_v17 = vld [vmem:[%s2907_s21 + $0x150] sm:$0xff]  ;;  %v414_v18 = vld [vmem:[%s2907_s21 + $0xd8] sm:$0xff] }
 0x17d   : > { %2592 = vmatprep.subr.bf16.mxu0 %v2591_v62  ;;  %2637 = vmatprep.subr.bf16.mxu1 %v2591_v62  ;;  %v430_v19 = vld [vmem:[%s2907_s21 + $0x158] sm:$0xff]  ;;  %v415_v20 = vld [vmem:[%s2907_s21 + $0xe0] sm:$0xff]  ;;  %v416_v22 = vld [vmem:[%s2907_s21 + $0xe8] sm:$0xff] }
 0x17e   : > { %475 = vperm.xlu1 %2657, %v394_v46   ;;  %472 = vperm.xlu0 %2656, %v393_v47   ;;  %v431_v21 = vld [vmem:[%s2907_s21 + $0x160] sm:$0xff]  ;;  %v432_v23 = vld [vmem:[%s2907_s21 + $0x168] sm:$0xff]  ;;  %v417_v24 = vld [vmem:[%s2907_s21 + $0xf0] sm:$0xff] }
 0x17f   : > { %v433_v25 = vld [vmem:[%s2907_s21 + $0x170] sm:$0xff]  ;;  %v418_v26 = vld [vmem:[%s2907_s21 + $0xf8] sm:$0xff]  ;;  %v419_v28 = vld [vmem:[%s2907_s21 + $0x100] sm:$0xff] }
 0x180   : > { %2594 = vmatpush3.bf16.msra.mxu0 %v2591_v62  ;;  %2641 = vmatpush3.bf16.msra.mxu1 %v2591_v62  ;;  %v434_v27 = vld [vmem:[%s2907_s21 + $0x178] sm:$0xff]  ;;  %v435_v29 = vld [vmem:[%s2907_s21 + $0x180] sm:$0xff]  ;;  %v420_v30 = vld [vmem:[%s2907_s21 + $0x108] sm:$0xff] }
 0x181   : > { %2596 = vmatprep.subr.bf16.mxu0 %v2595_v3  ;;  %2638 = vmatprep.subr.bf16.mxu1 %v2595_v3  ;;  %v436_v31 = vld [vmem:[%s2907_s21 + $0x188] sm:$0xff]  ;;  %v421_v32 = vld [vmem:[%s2907_s21 + $0x110] sm:$0xff]  ;;  %v422_v34 = vld [vmem:[%s2907_s21 + $0x118] sm:$0xff] }
 0x182   : > { %481 = vperm.xlu1 %2657, %v396_v48   ;;  %478 = vperm.xlu0 %2656, %v395_v49   ;;  %v437_v33 = vld [vmem:[%s2907_s21 + $0x190] sm:$0xff]  ;;  %v438_v35 = vld [vmem:[%s2907_s21 + $0x198] sm:$0xff]  ;;  %v423_v36 = vld [vmem:[%s2907_s21 + $0x120] sm:$0xff] }
 0x183   : > { %v439_v37 = vld [vmem:[%s2907_s21 + $0x1a0] sm:$0xff]  ;;  %v424_v38 = vld [vmem:[%s2907_s21 + $0x128] sm:$0xff]  ;;  %v425_v40 = vld [vmem:[%s2907_s21 + $0x130] sm:$0xff] }
 0x184   : > { %2598 = vmatpush3.bf16.msra.mxu0 %v2595_v3  ;;  %2642 = vmatpush3.bf16.msra.mxu1 %v2595_v3  ;;  %v440_v39 = vld [vmem:[%s2907_s21 + $0x1a8] sm:$0xff]  ;;  %v441_v41 = vld [vmem:[%s2907_s21 + $0x1b0] sm:$0xff]  ;;  %v426_v42 = vld [vmem:[%s2907_s21 + $0x138] sm:$0xff] }
 0x185   : > { %v442_v43 = vld [vmem:[%s2907_s21 + $0x1b8] sm:$0xff]  ;;  %v444_v44 = vld [vmem:[%s2907_s21 + $0x1c8] sm:$0xff]  ;;  %v443_v45 = vld [vmem:[%s2907_s21 + $0x1c0] sm:$0xff] }
 0x186   : > { %487 = vperm.xlu1 %2657, %v398_v50   ;;  %484 = vperm.xlu0 %2656, %v397_v51   ;;  %v446_v46 = vld [vmem:[%s2907_s21 + $0x1d8] sm:$0xff]  ;;  %v445_v47 = vld [vmem:[%s2907_s21 + $0x1d0] sm:$0xff]  ;;  %v448_v48 = vld [vmem:[%s2907_s21 + $0x1e8] sm:$0xff]  ;;  %v451_v50 = vlaneseq }
 0x187   : > { %v447_v49 = vld [vmem:[%s2907_s21 + $0x1e0] sm:$0xff]  ;;  %v450_v51 = vld [vmem:[%s2907_s21 + $0x1f8] sm:$0xff]  ;;  %v449_v52 = vld [vmem:[%s2907_s21 + $0x1f0] sm:$0xff]  ;;  %s2869_s21 = smov 112  }
 0x188   : > { %v3052_v53 = vand.u32 127, %v451_v50 }
 0x18a   : > { %493 = vperm.xlu1 %2657, %v400_v59   ;;  %490 = vperm.xlu0 %2656, %v399_v60  }
 0x18e   : > { %499 = vperm.xlu1 %2657, %v402_v1   ;;  %496 = vperm.xlu0 %2656, %v401_v2  }
 0x192   : > { %505 = vperm.xlu1 %2657, %v404_v4   ;;  %502 = vperm.xlu0 %2656, %v403_v5  }
 0x196   : > { %511 = vperm.xlu1 %2657, %v406_v6   ;;  %508 = vperm.xlu0 %2656, %v405_v7  }
 0x19a   : > { %517 = vperm.xlu1 %2657, %v408_v8   ;;  %514 = vperm.xlu0 %2656, %v407_v9  }
 0x19e   : > { %523 = vperm.xlu1 %2657, %v410_v10   ;;  %520 = vperm.xlu0 %2656, %v409_v11  }
 0x1a2   : > { %526 = vperm.xlu1 %2657, %v411_v12   ;;  %574 = vperm.xlu0 %2656, %v427_v13  }
 0x1a6   : > { %529 = vperm.xlu1 %2657, %v412_v14   ;;  %577 = vperm.xlu0 %2656, %v428_v15  }
 0x1aa   : > { %532 = vperm.xlu1 %2657, %v413_v16   ;;  %580 = vperm.xlu0 %2656, %v429_v17  }
 0x1ae   : > { %535 = vperm.xlu1 %2657, %v414_v18   ;;  %583 = vperm.xlu0 %2656, %v430_v19  }
 0x1b2   : > { %538 = vperm.xlu1 %2657, %v415_v20   ;;  %586 = vperm.xlu0 %2656, %v431_v21  }
 0x1b6   : > { %541 = vperm.xlu1 %2657, %v416_v22   ;;  %589 = vperm.xlu0 %2656, %v432_v23  }
 0x1ba   : > { %544 = vperm.xlu1 %2657, %v417_v24   ;;  %592 = vperm.xlu0 %2656, %v433_v25  }
 0x1be   : > { %547 = vperm.xlu1 %2657, %v418_v26   ;;  %595 = vperm.xlu0 %2656, %v434_v27  }
 0x1c2   : > { %550 = vperm.xlu1 %2657, %v419_v28   ;;  %598 = vperm.xlu0 %2656, %v435_v29  }
 0x1c6   : > { %553 = vperm.xlu1 %2657, %v420_v30   ;;  %601 = vperm.xlu0 %2656, %v436_v31  }
 0x1ca   : > { %556 = vperm.xlu1 %2657, %v421_v32   ;;  %604 = vperm.xlu0 %2656, %v437_v33  }
 0x1ce   : > { %559 = vperm.xlu1 %2657, %v422_v34   ;;  %607 = vperm.xlu0 %2656, %v438_v35  }
 0x1d2   : > { %562 = vperm.xlu1 %2657, %v423_v36   ;;  %610 = vperm.xlu0 %2656, %v439_v37  }
 0x1d6   : > { %565 = vperm.xlu1 %2657, %v424_v38   ;;  %613 = vperm.xlu0 %2656, %v440_v39  }
 0x1da   : > { %568 = vperm.xlu1 %2657, %v425_v40   ;;  %616 = vperm.xlu0 %2656, %v441_v41  }
 0x1de   : > { %571 = vperm.xlu1 %2657, %v426_v42   ;;  %619 = vperm.xlu0 %2656, %v442_v43  }
 0x1e2   : > { %625 = vperm.xlu1 %2657, %v444_v44   ;;  %622 = vperm.xlu0 %2656, %v443_v45  }
 0x1e6   : > { %631 = vperm.xlu1 %2657, %v446_v46   ;;  %628 = vperm.xlu0 %2656, %v445_v47  }
 0x1ea   : > { %637 = vperm.xlu1 %2657, %v448_v48   ;;  %634 = vperm.xlu0 %2656, %v447_v49  }
 0x1ee   : > { %643 = vperm.xlu1 %2657, %v450_v51   ;;  %640 = vperm.xlu0 %2656, %v449_v52  }
 0x1f1   : > { %v461_v54 = vpop.permute.xlu1 %460  ;;  %v455_v55 = vpop.permute.xlu0 %454 }
 0x1f2   : > { %vm645_vm3 = vcmp.eq.s32.totalorder %v455_v55, %v3052_v53  ;;  %vm647_vm4 = vcmp.eq.s32.totalorder %v461_v54, %v3052_v53 }
 0x1f3   : > { %v3056_v57 = vsel %vm645_vm3, 1.0, %v2868_v56  ;;  %v3066_v61 = vsel %vm647_vm4, 1.0, %v2868_v56 }
 0x1f4   : > { %2479 = vmatprep.mubr.msk.f32.mxu0 %vm845_vm2, %v3056_v57 }
 0x1f5   : > { %v464_v58 = vpop.permute.xlu1 %463  ;;  %v458_v59 = vpop.permute.xlu0 %457 }
 0x1f6   : > { %vm646_vm5 = vcmp.eq.s32.totalorder %v458_v59, %v3052_v53  ;;  %vm648_vm6 = vcmp.eq.s32.totalorder %v464_v58, %v3052_v53 }
 0x1f7   : > { %v3063_v60 = vsel %vm646_vm5, 1.0, %v2868_v56  ;;  %v3075_v0 = vsel %vm648_vm6, 1.0, %v2868_v56 }
 0x1f8   : > { %2480 = vmatmul.mubr.msk.f32.vlgmr.msra.gmra.mrb[0].mxu0 %vm845_vm2, %v3063_v60 }
 0x1f9   : > { %v470_v62 = vpop.permute.xlu1 %469  ;;  %2482 = vmatprep.mubr.msk.f32.mxu0 %vm845_vm2, %v3066_v61  ;;  %v467_v63 = vpop.permute.xlu0 %466 }
 0x1fa   : > { %vm649_vm7 = vcmp.eq.s32.totalorder %v467_v63, %v3052_v53  ;;  %vm650_vm8 = vcmp.eq.s32.totalorder %v470_v62, %v3052_v53 }
 0x1fb   : > { %v3078_v1 = vsel %vm649_vm7, 1.0, %v2868_v56  ;;  %v3087_v4 = vsel %vm650_vm8, 1.0, %v2868_v56 }
 0x1fc   : > { %2483 = vmatmul.mubr.msk.f32.gmra.mrb[2].mxu0 %vm845_vm2, %v3075_v0 }
 0x1fd   : > { %v476_v2 = vpop.permute.xlu1 %475  ;;  %2485 = vmatprep.mubr.msk.f32.mxu0 %vm845_vm2, %v3078_v1  ;;  %v473_v3 = vpop.permute.xlu0 %472 }
 0x1fe   : > { %vm651_vm9 = vcmp.eq.s32.totalorder %v473_v3, %v3052_v53  ;;  %vm652_vm10 = vcmp.eq.s32.totalorder %v476_v2, %v3052_v53 }
 0x1ff   : > { %v3090_v5 = vsel %vm651_vm9, 1.0, %v2868_v56  ;;  %v3099_v8 = vsel %vm652_vm10, 1.0, %v2868_v56 }
 0x200   : > { %3837 = vst [vmem:[#allocation3_spill] sm:$0xff] %v3090_v5  ;;  %2486 = vmatmul.mubr.msk.f32.gmra.mrb[4].mxu0 %vm845_vm2, %v3087_v4  ;;  %3838 = vst [vmem:[#allocation4_spill] sm:$0xff] %v3099_v8 }
 0x201   : > { %v482_v6 = vpop.permute.xlu1 %481  ;;  %2488 = vmatprep.mubr.msk.f32.mxu0 %vm845_vm2, %v3090_v5  ;;  %v479_v7 = vpop.permute.xlu0 %478 }
 0x202   : > { %vm653_vm11 = vcmp.eq.s32.totalorder %v479_v7, %v3052_v53  ;;  %vm654_vm12 = vcmp.eq.s32.totalorder %v482_v6, %v3052_v53 }
 0x203   : > { %v3102_v9 = vsel %vm653_vm11, 1.0, %v2868_v56  ;;  %v3111_v12 = vsel %vm654_vm12, 1.0, %v2868_v56 }
 0x204   : > { %3839 = vst [vmem:[#allocation5_spill] sm:$0xff] %v3102_v9  ;;  %2489 = vmatmul.mubr.msk.f32.gmra.mrb[6].mxu0 %vm845_vm2, %v3099_v8  ;;  %3840 = vst [vmem:[#allocation6_spill] sm:$0xff] %v3111_v12 }
 0x205   : > { %v488_v10 = vpop.permute.xlu1 %487  ;;  %2491 = vmatprep.mubr.msk.f32.mxu0 %vm845_vm2, %v3102_v9  ;;  %v485_v11 = vpop.permute.xlu0 %484 }
 0x206   : > { %vm655_vm13 = vcmp.eq.s32.totalorder %v485_v11, %v3052_v53  ;;  %vm656_vm14 = vcmp.eq.s32.totalorder %v488_v10, %v3052_v53 }
 0x207   : > { %v3114_v13 = vsel %vm655_vm13, 1.0, %v2868_v56  ;;  %v3123_v16 = vsel %vm656_vm14, 1.0, %v2868_v56 }
 0x208   : > { %3841 = vst [vmem:[#allocation7_spill] sm:$0xff] %v3114_v13  ;;  %2492 = vmatmul.mubr.msk.f32.gmra.mrb[8].mxu0 %vm845_vm2, %v3111_v12  ;;  %3842 = vst [vmem:[#allocation8_spill] sm:$0xff] %v3123_v16 }
 0x209   : > { %v494_v14 = vpop.permute.xlu1 %493  ;;  %2494 = vmatprep.mubr.msk.f32.mxu0 %vm845_vm2, %v3114_v13  ;;  %v491_v15 = vpop.permute.xlu0 %490 }
 0x20a   : > { %vm657_vm15 = vcmp.eq.s32.totalorder %v491_v15, %v3052_v53  ;;  %vm658_vm0 = vcmp.eq.s32.totalorder %v494_v14, %v3052_v53 }
 0x20b   : > { %v3126_v17 = vsel %vm657_vm15, 1.0, %v2868_v56  ;;  %v3135_v20 = vsel %vm658_vm0, 1.0, %v2868_v56 }
 0x20c   : > { %3843 = vst [vmem:[#allocation9_spill] sm:$0xff] %v3126_v17  ;;  %2495 = vmatmul.mubr.msk.f32.gmra.mrb[10].mxu0 %vm845_vm2, %v3123_v16  ;;  %3844 = vst [vmem:[#allocation10_spill] sm:$0xff] %v3135_v20 }
 0x20d   : > { %v500_v18 = vpop.permute.xlu1 %499  ;;  %2497 = vmatprep.mubr.msk.f32.mxu0 %vm845_vm2, %v3126_v17  ;;  %v497_v19 = vpop.permute.xlu0 %496 }
 0x20e   : > { %vm659_vm1 = vcmp.eq.s32.totalorder %v497_v19, %v3052_v53  ;;  %vm660_vm3 = vcmp.eq.s32.totalorder %v500_v18, %v3052_v53 }
 0x20f   : > { %v3138_v21 = vsel %vm659_vm1, 1.0, %v2868_v56  ;;  %v3148_v24 = vsel %vm660_vm3, 1.0, %v2868_v56 }
 0x210   : > { %3845 = vst [vmem:[#allocation11_spill] sm:$0xff] %v3138_v21  ;;  %2498 = vmatmul.mubr.msk.f32.gmra.mrb[12].mxu0 %vm845_vm2, %v3135_v20  ;;  %3846 = vst [vmem:[#allocation12_spill] sm:$0xff] %v3148_v24 }
 0x211   : > { %v506_v22 = vpop.permute.xlu1 %505  ;;  %2500 = vmatprep.mubr.msk.f32.mxu0 %vm845_vm2, %v3138_v21  ;;  %v503_v23 = vpop.permute.xlu0 %502 }
 0x212   : > { %vm662_vm4 = vcmp.eq.s32.totalorder %v506_v22, %v3052_v53  ;;  %vm661_vm5 = vcmp.eq.s32.totalorder %v503_v23, %v3052_v53 }
 0x213   : > { %v3151_v25 = vsel %vm662_vm4, 1.0, %v2868_v56  ;;  %v3154_v26 = vsel %vm661_vm5, 1.0, %v2868_v56 }
 0x214   : > { %2501 = vmatmul.mubr.msk.f32.gmra.mrb[14].mxu0 %vm845_vm2, %v3148_v24 }
 0x215   : > { %v512_v29 = vpop.permute.xlu1 %511  ;;  %2503 = vmatprep.mubr.msk.f32.mxu0 %vm845_vm2, %v3154_v26  ;;  %v509_v30 = vpop.permute.xlu0 %508 }
 0x216   : > { %vm664_vm6 = vcmp.eq.s32.totalorder %v512_v29, %v3052_v53  ;;  %vm663_vm7 = vcmp.eq.s32.totalorder %v509_v30, %v3052_v53 }
 0x217   : > { %v3167_v31 = vsel %vm664_vm6, 1.0, %v2868_v56  ;;  %v3170_v32 = vsel %vm663_vm7, 1.0, %v2868_v56 }
 0x218   : > { %2504 = vmatmul.mubr.msk.f32.gmra.mrb[16].mxu0 %vm845_vm2, %v3151_v25 }
 0x219   : > { %v518_v35 = vpop.permute.xlu1 %517  ;;  %2506 = vmatprep.mubr.msk.f32.mxu0 %vm845_vm2, %v3170_v32  ;;  %v515_v36 = vpop.permute.xlu0 %514 }
 0x21a   : > { %vm666_vm8 = vcmp.eq.s32.totalorder %v518_v35, %v3052_v53  ;;  %vm665_vm9 = vcmp.eq.s32.totalorder %v515_v36, %v3052_v53 }
 0x21b   : > { %v3183_v37 = vsel %vm666_vm8, 1.0, %v2868_v56  ;;  %v3186_v38 = vsel %vm665_vm9, 1.0, %v2868_v56 }
 0x21c   : > { %2507 = vmatmul.mubr.msk.f32.gmra.mrb[18].mxu0 %vm845_vm2, %v3167_v31 }
 0x21d   : > { %v524_v41 = vpop.permute.xlu1 %523  ;;  %2509 = vmatprep.mubr.msk.f32.mxu0 %vm845_vm2, %v3186_v38  ;;  %v521_v42 = vpop.permute.xlu0 %520 }
 0x21e   : > { %vm668_vm10 = vcmp.eq.s32.totalorder %v524_v41, %v3052_v53  ;;  %vm667_vm11 = vcmp.eq.s32.totalorder %v521_v42, %v3052_v53 }
 0x21f   : > { %v3199_v43 = vsel %vm668_vm10, 1.0, %v2868_v56  ;;  %v3202_v44 = vsel %vm667_vm11, 1.0, %v2868_v56 }
 0x220   : > { %3847 = vst [vmem:[#allocation13_spill] sm:$0xff] %v3199_v43  ;;  %3848 = vst [vmem:[#allocation14_spill] sm:$0xff] %v3202_v44  ;;  %2510 = vmatmul.mubr.msk.f32.gmra.mrb[20].mxu0 %vm845_vm2, %v3183_v37 }
 0x221   : > { %v527_v47 = vpop.permute.xlu1 %526  ;;  %2512 = vmatprep.mubr.msk.f32.mxu0 %vm845_vm2, %v3202_v44  ;;  %v575_v48 = vpop.permute.xlu0 %574 }
 0x222   : > { %vm669_vm12 = vcmp.eq.s32.totalorder %v527_v47, %v3052_v53  ;;  %vm685_vm13 = vcmp.eq.s32.totalorder %v575_v48, %v3052_v53 }
 0x223   : > { %v3215_v49 = vsel %vm669_vm12, 1.0, %v2868_v56  ;;  %v2181_v50 = vsel %vm685_vm13, 1.0, %v2868_v56 }
 0x224   : > { %3849 = vst [vmem:[#allocation15_spill] sm:$0xff] %v3215_v49  ;;  %2513 = vmatmul.mubr.msk.f32.gmra.mrb[22].mxu0 %vm845_vm2, %v3199_v43  ;;  %2539 = vmatprep.mubr.msk.f32.mxu1 %vm845_vm2, %v2181_v50 }
 0x225   : > { %v530_v52 = vpop.permute.xlu1 %529  ;;  %2515 = vmatprep.mubr.msk.f32.mxu0 %vm845_vm2, %v3215_v49  ;;  %v578_v54 = vpop.permute.xlu0 %577 }
 0x226   : > { %vm670_vm14 = vcmp.eq.s32.totalorder %v530_v52, %v3052_v53  ;;  %vm686_vm15 = vcmp.eq.s32.totalorder %v578_v54, %v3052_v53 }
 0x227   : > { %v3228_v55 = vsel %vm670_vm14, 1.0, %v2868_v56  ;;  %v2182_v58 = vsel %vm686_vm15, 1.0, %v2868_v56 }
 0x228   : > { %3850 = vst [vmem:[#allocation16_spill] sm:$0xff] %v3228_v55  ;;  %2516 = vmatmul.mubr.msk.f32.gmra.mrb[24].mxu0 %vm845_vm2, %v3228_v55  ;;  %2540 = vmatmul.mubr.msk.f32.vlgmr.msra.gmra.mrb[0].mxu1 %vm845_vm2, %v2182_v58 }
 0x229   : > { %v533_v62 = vpop.permute.xlu1 %532  ;;  %v581_v63 = vpop.permute.xlu0 %580 }
 0x22a   : > { %vm671_vm0 = vcmp.eq.s32.totalorder %v533_v62, %v3052_v53  ;;  %vm687_vm1 = vcmp.eq.s32.totalorder %v581_v63, %v3052_v53 }
 0x22b   : > { %v3239_v2 = vsel %vm671_vm0, 1.0, %v2868_v56  ;;  %v2183_v3 = vsel %vm687_vm1, 1.0, %v2868_v56 }
 0x22c   : > { %3851 = vst [vmem:[#allocation17_spill] sm:$0xff] %v3239_v2  ;;  %2518 = vmatprep.mubr.msk.f32.mxu0 %vm845_vm2, %v3239_v2  ;;  %2542 = vmatprep.mubr.msk.f32.mxu1 %vm845_vm2, %v2183_v3 }
 0x22d   : > { %v536_v7 = vpop.permute.xlu1 %535  ;;  %v584_v10 = vpop.permute.xlu0 %583 }
 0x22e   : > { %vm672_vm3 = vcmp.eq.s32.totalorder %v536_v7, %v3052_v53  ;;  %vm688_vm4 = vcmp.eq.s32.totalorder %v584_v10, %v3052_v53 }
 0x22f   : > { %v3250_v11 = vsel %vm672_vm3, 1.0, %v2868_v56  ;;  %v2184_v14 = vsel %vm688_vm4, 1.0, %v2868_v56 }
 0x230   : > { %3852 = vst [vmem:[#allocation18_spill] sm:$0xff] %v3250_v11  ;;  %2519 = vmatmul.mubr.msk.f32.gmra.mrb[26].mxu0 %vm845_vm2, %v3250_v11  ;;  %2543 = vmatmul.mubr.msk.f32.gmra.mrb[2].mxu1 %vm845_vm2, %v2184_v14 }
 0x231   : > { %v539_v18 = vpop.permute.xlu1 %538  ;;  %v587_v19 = vpop.permute.xlu0 %586 }
 0x232   : > { %vm673_vm5 = vcmp.eq.s32.totalorder %v539_v18, %v3052_v53  ;;  %vm689_vm6 = vcmp.eq.s32.totalorder %v587_v19, %v3052_v53 }
 0x233   : > { %v3261_v22 = vsel %vm673_vm5, 1.0, %v2868_v56  ;;  %v2185_v23 = vsel %vm689_vm6, 1.0, %v2868_v56 }
 0x234   : > { %3853 = vst [vmem:[#allocation19_spill] sm:$0xff] %v3261_v22  ;;  %2521 = vmatprep.mubr.msk.f32.mxu0 %vm845_vm2, %v3261_v22  ;;  %2545 = vmatprep.mubr.msk.f32.mxu1 %vm845_vm2, %v2185_v23 }
 0x235   : > { %v542_v30 = vpop.permute.xlu1 %541  ;;  %v590_v35 = vpop.permute.xlu0 %589 }
 0x236   : > { %vm674_vm7 = vcmp.eq.s32.totalorder %v542_v30, %v3052_v53  ;;  %vm690_vm8 = vcmp.eq.s32.totalorder %v590_v35, %v3052_v53 }
 0x237   : > { %v3272_v36 = vsel %vm674_vm7, 1.0, %v2868_v56  ;;  %v2186_v41 = vsel %vm690_vm8, 1.0, %v2868_v56 }
 0x238   : > { %3854 = vst [vmem:[#allocation20_spill] sm:$0xff] %v3272_v36  ;;  %2522 = vmatmul.mubr.msk.f32.gmra.mrb[28].mxu0 %vm845_vm2, %v3272_v36  ;;  %2546 = vmatmul.mubr.msk.f32.gmra.mrb[4].mxu1 %vm845_vm2, %v2186_v41 }
 0x239   : > { %v545_v47 = vpop.permute.xlu1 %544  ;;  %v593_v48 = vpop.permute.xlu0 %592 }
 0x23a   : > { %vm675_vm9 = vcmp.eq.s32.totalorder %v545_v47, %v3052_v53  ;;  %vm691_vm10 = vcmp.eq.s32.totalorder %v593_v48, %v3052_v53 }
 0x23b   : > { %v3283_v50 = vsel %vm675_vm9, 1.0, %v2868_v56  ;;  %v2187_v52 = vsel %vm691_vm10, 1.0, %v2868_v56 }
 0x23c   : > { %3855 = vst [vmem:[#allocation21_spill] sm:$0xff] %v3283_v50  ;;  %2524 = vmatprep.mubr.msk.f32.mxu0 %vm845_vm2, %v3283_v50  ;;  %2548 = vmatprep.mubr.msk.f32.mxu1 %vm845_vm2, %v2187_v52 }
 0x23d   : > { %v548_v58 = vpop.permute.xlu1 %547  ;;  %v596_v62 = vpop.permute.xlu0 %595 }
 0x23e   : > { %vm676_vm11 = vcmp.eq.s32.totalorder %v548_v58, %v3052_v53  ;;  %vm692_vm12 = vcmp.eq.s32.totalorder %v596_v62, %v3052_v53 }
 0x23f   : > { %v3294_v63 = vsel %vm676_vm11, 1.0, %v2868_v56  ;;  %v2188_v3 = vsel %vm692_vm12, 1.0, %v2868_v56 }
 0x240   : > { %3856 = vst [vmem:[#allocation22_spill] sm:$0xff] %v3294_v63  ;;  %2525 = vmatmul.mubr.msk.f32.gmra.mrb[30].mxu0 %vm845_vm2, %v3294_v63  ;;  %2549 = vmatmul.mubr.msk.f32.gmra.mrb[6].mxu1 %vm845_vm2, %v2188_v3 }
 0x241   : > { %v551_v10 = vpop.permute.xlu1 %550  ;;  %v599_v14 = vpop.permute.xlu0 %598 }
 0x242   : > { %vm677_vm13 = vcmp.eq.s32.totalorder %v551_v10, %v3052_v53  ;;  %vm693_vm14 = vcmp.eq.s32.totalorder %v599_v14, %v3052_v53 }
 0x243   : > { %v2173_v18 = vsel %vm677_vm13, 1.0, %v2868_v56  ;;  %v2189_v19 = vsel %vm693_vm14, 1.0, %v2868_v56 }
 0x244   : > { %2527 = vmatprep.mubr.msk.f32.mxu0 %vm845_vm2, %v2173_v18  ;;  %2551 = vmatprep.mubr.msk.f32.mxu1 %vm845_vm2, %v2189_v19 }
 0x245   : > { %v554_v23 = vpop.permute.xlu1 %553  ;;  %v602_v30 = vpop.permute.xlu0 %601 }
 0x246   : > { %vm678_vm15 = vcmp.eq.s32.totalorder %v554_v23, %v3052_v53  ;;  %vm694_vm0 = vcmp.eq.s32.totalorder %v602_v30, %v3052_v53 }
 0x247   : > { %v2174_v35 = vsel %vm678_vm15, 1.0, %v2868_v56  ;;  %v2190_v41 = vsel %vm694_vm0, 1.0, %v2868_v56 }
 0x248   : > { %2528 = vmatmul.mubr.msk.f32.gmra.mrb[32].mxu0 %vm845_vm2, %v2174_v35  ;;  %2552 = vmatmul.mubr.msk.f32.gmra.mrb[8].mxu1 %vm845_vm2, %v2190_v41 }
 0x249   : > { %v557_v47 = vpop.permute.xlu1 %556  ;;  %v605_v48 = vpop.permute.xlu0 %604 }
 0x24a   : > { %vm679_vm1 = vcmp.eq.s32.totalorder %v557_v47, %v3052_v53  ;;  %vm695_vm3 = vcmp.eq.s32.totalorder %v605_v48, %v3052_v53 }
 0x24b   : > { %v2175_v52 = vsel %vm679_vm1, 1.0, %v2868_v56  ;;  %v2191_v58 = vsel %vm695_vm3, 1.0, %v2868_v56 }
 0x24c   : > { %2530 = vmatprep.mubr.msk.f32.mxu0 %vm845_vm2, %v2175_v52  ;;  %2554 = vmatprep.mubr.msk.f32.mxu1 %vm845_vm2, %v2191_v58 }
 0x24d   : > { %v560_v62 = vpop.permute.xlu1 %559  ;;  %v608_v3 = vpop.permute.xlu0 %607 }
 0x24e   : > { %vm680_vm4 = vcmp.eq.s32.totalorder %v560_v62, %v3052_v53  ;;  %vm696_vm5 = vcmp.eq.s32.totalorder %v608_v3, %v3052_v53 }
 0x24f   : > { %v2176_v10 = vsel %vm680_vm4, 1.0, %v2868_v56  ;;  %v2192_v14 = vsel %vm696_vm5, 1.0, %v2868_v56 }
 0x250   : > { %2531 = vmatmul.mubr.msk.f32.gmra.mrb[34].mxu0 %vm845_vm2, %v2176_v10  ;;  %2555 = vmatmul.mubr.msk.f32.gmra.mrb[10].mxu1 %vm845_vm2, %v2192_v14 }
 0x251   : > { %v563_v18 = vpop.permute.xlu1 %562  ;;  %v611_v19 = vpop.permute.xlu0 %610 }
 0x252   : > { %vm681_vm6 = vcmp.eq.s32.totalorder %v563_v18, %v3052_v53  ;;  %vm697_vm7 = vcmp.eq.s32.totalorder %v611_v19, %v3052_v53 }
 0x253   : > { %v2177_v23 = vsel %vm681_vm6, 1.0, %v2868_v56  ;;  %v2193_v30 = vsel %vm697_vm7, 1.0, %v2868_v56 }
 0x254   : > { %2533 = vmatprep.mubr.msk.f32.mxu0 %vm845_vm2, %v2177_v23  ;;  %2557 = vmatprep.mubr.msk.f32.mxu1 %vm845_vm2, %v2193_v30 }
 0x255   : > { %v566_v35 = vpop.permute.xlu1 %565  ;;  %v614_v41 = vpop.permute.xlu0 %613 }
 0x256   : > { %vm682_vm8 = vcmp.eq.s32.totalorder %v566_v35, %v3052_v53  ;;  %vm698_vm9 = vcmp.eq.s32.totalorder %v614_v41, %v3052_v53 }
 0x257   : > { %v2178_v47 = vsel %vm682_vm8, 1.0, %v2868_v56  ;;  %v2194_v48 = vsel %vm698_vm9, 1.0, %v2868_v56 }
 0x258   : > { %2534 = vmatmul.mubr.msk.f32.gmra.mrb[36].mxu0 %vm845_vm2, %v2178_v47  ;;  %2558 = vmatmul.mubr.msk.f32.gmra.mrb[12].mxu1 %vm845_vm2, %v2194_v48 }
 0x259   : > { %v569_v52 = vpop.permute.xlu1 %568  ;;  %v617_v58 = vpop.permute.xlu0 %616 }
 0x25a   : > { %vm683_vm10 = vcmp.eq.s32.totalorder %v569_v52, %v3052_v53  ;;  %vm699_vm11 = vcmp.eq.s32.totalorder %v617_v58, %v3052_v53 }
 0x25b   : > { %v2179_v62 = vsel %vm683_vm10, 1.0, %v2868_v56  ;;  %v2195_v3 = vsel %vm699_vm11, 1.0, %v2868_v56 }
 0x25c   : > { %2536 = vmatprep.mubr.msk.f32.mxu0 %vm845_vm2, %v2179_v62  ;;  %2560 = vmatprep.mubr.msk.f32.mxu1 %vm845_vm2, %v2195_v3 }
 0x25d   : > { %v572_v10 = vpop.permute.xlu1 %571  ;;  %v620_v14 = vpop.permute.xlu0 %619 }
 0x25e   : > { %vm684_vm12 = vcmp.eq.s32.totalorder %v572_v10, %v3052_v53  ;;  %vm700_vm13 = vcmp.eq.s32.totalorder %v620_v14, %v3052_v53 }
 0x25f   : > { %v2180_v18 = vsel %vm684_vm12, 1.0, %v2868_v56  ;;  %v2196_v19 = vsel %vm700_vm13, 1.0, %v2868_v56 }
 0x260   : > { %2537 = vmatmul.mubr.msk.f32.gmra.mrb[38].mxu0 %vm845_vm2, %v2180_v18  ;;  %2561 = vmatmul.mubr.msk.f32.gmra.mrb[14].mxu1 %vm845_vm2, %v2196_v19 }
 0x261   : > { %v626_v23 = vpop.permute.xlu1 %625  ;;  %v623_v30 = vpop.permute.xlu0 %622 }
 0x262   : > { %vm702_vm14 = vcmp.eq.s32.totalorder %v626_v23, %v3052_v53  ;;  %vm701_vm15 = vcmp.eq.s32.totalorder %v623_v30, %v3052_v53 }
 0x263   : > { %v2198_v35 = vsel %vm702_vm14, 1.0, %v2868_v56  ;;  %v2197_v41 = vsel %vm701_vm15, 1.0, %v2868_v56 }
 0x264   : > { %2563 = vmatprep.mubr.msk.f32.mxu1 %vm845_vm2, %v2197_v41 }
 0x265   : > { %v632_v47 = vpop.permute.xlu1 %631  ;;  %2564 = vmatmul.mubr.msk.f32.gmra.mrb[16].mxu1 %vm845_vm2, %v2198_v35  ;;  %v629_v48 = vpop.permute.xlu0 %628 }
 0x266   : > { %vm704_vm0 = vcmp.eq.s32.totalorder %v632_v47, %v3052_v53  ;;  %vm703_vm1 = vcmp.eq.s32.totalorder %v629_v48, %v3052_v53 }
 0x267   : > { %v2200_v52 = vsel %vm704_vm0, 1.0, %v2868_v56  ;;  %v2199_v58 = vsel %vm703_vm1, 1.0, %v2868_v56 }
 0x268   : > { %2566 = vmatprep.mubr.msk.f32.mxu1 %vm845_vm2, %v2199_v58 }
 0x269   : > { %v638_v62 = vpop.permute.xlu1 %637  ;;  %2567 = vmatmul.mubr.msk.f32.gmra.mrb[18].mxu1 %vm845_vm2, %v2200_v52  ;;  %v635_v3 = vpop.permute.xlu0 %634 }
 0x26a   : > { %vm706_vm3 = vcmp.eq.s32.totalorder %v638_v62, %v3052_v53  ;;  %vm705_vm4 = vcmp.eq.s32.totalorder %v635_v3, %v3052_v53 }
 0x26b   : > { %v2202_v10 = vsel %vm706_vm3, 1.0, %v2868_v56  ;;  %v2201_v14 = vsel %vm705_vm4, 1.0, %v2868_v56 }
 0x26c   : > { %2569 = vmatprep.mubr.msk.f32.mxu1 %vm845_vm2, %v2201_v14 }
 0x26d   : > { %v644_v18 = vpop.permute.xlu1 %643  ;;  %2570 = vmatmul.mubr.msk.f32.gmra.mrb[20].mxu1 %vm845_vm2, %v2202_v10  ;;  %v641_v19 = vpop.permute.xlu0 %640 }
 0x26e   : > { %vm708_vm5 = vcmp.eq.s32.totalorder %v644_v18, %v3052_v53  ;;  %vm707_vm6 = vcmp.eq.s32.totalorder %v641_v19, %v3052_v53 }
 0x26f   : > { %v2204_v23 = vsel %vm708_vm5, 1.0, %v2868_v56  ;;  %v2203_v30 = vsel %vm707_vm6, 1.0, %v2868_v56 }
 0x270   : > { %2572 = vmatprep.mubr.msk.f32.mxu1 %vm845_vm2, %v2203_v30 }
 0x271   : > { %2573 = vmatmul.mubr.msk.f32.gmra.mrb[22].mxu1 %vm845_vm2, %v2204_v23  ;;  %vm2088_vm2 = vcmask 130048  }
 0x2cb   : > { %v3374_v35 = vpop.f32.mrb[0].mxu0 }
 0x2cc   : > { %v3376_v41 = vpop.f32.mrb[1].mxu0 }
 0x2cf   : > { %v3378_v47 = vpop.f32.mrb[2].mxu0 }
 0x2d0   : > { %3857 = vst [vmem:[#allocation23_spill] sm:$0xff] %v3378_v47  ;;  %v3380_v48 = vpop.f32.mrb[3].mxu0 }
 0x2d1   : > { %3858 = vst [vmem:[#allocation24_spill] sm:$0xff] %v3380_v48 }
 0x2d3   : > { %v3382_v52 = vpop.f32.mrb[4].mxu0 }
 0x2d4   : > { %3859 = vst [vmem:[#allocation25_spill] sm:$0xff] %v3382_v52  ;;  %v3384_v58 = vpop.f32.mrb[5].mxu0 }
 0x2d5   : > { %3860 = vst [vmem:[#allocation26_spill] sm:$0xff] %v3384_v58 }
 0x2d7   : > { %v3386_v53 = vpop.f32.mrb[6].mxu0 }
 0x2d8   : > { %3861 = vst [vmem:[#allocation27_spill] sm:$0xff] %v3386_v53  ;;  %v3388_v62 = vpop.f32.mrb[7].mxu0 }
 0x2d9   : > { %3862 = vst [vmem:[#allocation28_spill] sm:$0xff] %v3388_v62 }
 0x2db   : > { %v3390_v56 = vpop.f32.mrb[8].mxu0 }
 0x2dc   : > { %v3392_v3 = vpop.f32.mrb[9].mxu0 }
 0x2df   : > { %v3394_v10 = vpop.f32.mrb[10].mxu0 }
 0x2e0   : > { %v3396_v14 = vpop.f32.mrb[11].mxu0 }
 0x2e3   : > { %v3398_v18 = vpop.f32.mrb[12].mxu0 }
 0x2e4   : > { %v3400_v19 = vpop.f32.mrb[13].mxu0 }
 0x2e7   : > { %v3402_v23 = vpop.f32.mrb[14].mxu0 }
 0x2e8   : > { %v3404_v30 = vpop.f32.mrb[15].mxu0 }
 0x2eb   : > { %v3406_v7 = vpop.f32.mrb[16].mxu0 }
 0x2ec   : > { %v3408_v54 = vpop.f32.mrb[17].mxu0 }
 0x2ef   : > { %v3410_v42 = vpop.f32.mrb[18].mxu0 }
 0x2f0   : > { %v3412_v29 = vpop.f32.mrb[19].mxu0 }
 0x2f3   : > { %v3414_v15 = vpop.f32.mrb[20].mxu0 }
 0x2f4   : > { %v3416_v6 = vpop.f32.mrb[21].mxu0 }
 0x2f7   : > { %v3418_v59 = vpop.f32.mrb[22].mxu0 }
 0x2f8   : > { %v3420_v51 = vpop.f32.mrb[23].mxu0 }
 0x2fb   : > { %v3422_v45 = vpop.f32.mrb[24].mxu0  ;;  %v3424_v46 = vpop.f32.mrb[0].mxu1 }
 0x2fc   : > { %v3426_v39 = vpop.f32.mrb[25].mxu0  ;;  %1473 = vrot.lane.b32.xlu1 %v3424_v46, %s2869_s21  ;;  %v3430_v40 = vpop.f32.mrb[1].mxu1 }
 0x2fd   : > { %1471 = vrot.lane.b32.xlu0 %v3430_v40, %s2869_s21 }
 0x303   : > { %v3434_v33 = vpop.f32.mrb[26].mxu0  ;;  %v3436_v34 = vpop.f32.mrb[2].mxu1 }
 0x304   : > { %v3438_v27 = vpop.f32.mrb[27].mxu0  ;;  %1477 = vrot.lane.b32.xlu1 %v3436_v34, %s2869_s21  ;;  %v3442_v28 = vpop.f32.mrb[3].mxu1 }
 0x305   : > { %1475 = vrot.lane.b32.xlu0 %v3442_v28, %s2869_s21 }
 0x30b   : > { %v3446_v62 = vpop.f32.mrb[28].mxu0  ;;  %v3448_v53 = vpop.f32.mrb[4].mxu1 }
 0x30c   : > { %v3450_v63 = vpop.f32.mrb[29].mxu0  ;;  %1481 = vrot.lane.b32.xlu1 %v3448_v53, %s2869_s21  ;;  %v3454_v24 = vpop.f32.mrb[5].mxu1 }
 0x30d   : > { %1479 = vrot.lane.b32.xlu0 %v3454_v24, %s2869_s21 }
 0x313   : > { %v3458_v50 = vpop.f32.mrb[30].mxu0  ;;  %v3460_v21 = vpop.f32.mrb[6].mxu1 }
 0x314   : > { %v3462_v36 = vpop.f32.mrb[31].mxu0  ;;  %1485 = vrot.lane.b32.xlu1 %v3460_v21, %s2869_s21  ;;  %v3466_v20 = vpop.f32.mrb[7].mxu1 }
 0x315   : > { %1483 = vrot.lane.b32.xlu0 %v3466_v20, %s2869_s21 }
 0x31b   : > { %v2529_v22 = vpop.f32.mrb[32].mxu0  ;;  %v2553_v17 = vpop.f32.mrb[8].mxu1 }
 0x31c   : > { %v1264_v11 = vpop.f32.mrb[33].mxu0  ;;  %1489 = vrot.lane.b32.xlu1 %v2553_v17, %s2869_s21  ;;  %v1344_v16 = vpop.f32.mrb[9].mxu1 }
 0x31d   : > { %1487 = vrot.lane.b32.xlu0 %v1344_v16, %s2869_s21 }
 0x320   : > { %1809 = vrot.lane.b32.xlu1 %v2553_v17, %s2870_s16 }
 0x321   : > { %1807 = vrot.lane.b32.xlu0 %v1344_v16, %s2870_s16 }
 0x323   : > { %v2532_v2 = vpop.f32.mrb[34].mxu0  ;;  %v2556_v13 = vpop.f32.mrb[10].mxu1 }
 0x324   : > { %v1274_v58 = vpop.f32.mrb[35].mxu0  ;;  %1493 = vrot.lane.b32.xlu1 %v2556_v13, %s2869_s21  ;;  %v1354_v55 = vpop.f32.mrb[11].mxu1 }
 0x325   : > { %1491 = vrot.lane.b32.xlu0 %v1354_v55, %s2869_s21 }
 0x328   : > { %1813 = vrot.lane.b32.xlu1 %v2556_v13, %s2870_s16 }
 0x329   : > { %1811 = vrot.lane.b32.xlu0 %v1354_v55, %s2870_s16 }
 0x32b   : > { %v2535_v12 = vpop.f32.mrb[36].mxu0  ;;  %v2559_v52 = vpop.f32.mrb[12].mxu1 }
 0x32c   : > { %v1284_v49 = vpop.f32.mrb[37].mxu0  ;;  %1497 = vrot.lane.b32.xlu1 %v2559_v52, %s2869_s21  ;;  %v1364_v17 = vpop.f32.mrb[13].mxu1 }
 0x32d   : > { %1495 = vrot.lane.b32.xlu0 %v1364_v17, %s2869_s21 }
 0x330   : > { %1817 = vrot.lane.b32.xlu1 %v2559_v52, %s2870_s16 }
 0x331   : > { %1815 = vrot.lane.b32.xlu0 %v1364_v17, %s2870_s16 }
 0x333   : > { %v2538_v16 = vpop.f32.mrb[38].mxu0  ;;  %v2562_v9 = vpop.f32.mrb[14].mxu1 }
 0x334   : > { %v3482_v48 = vpop.f32.mrb[39].mxu0  ;;  %1501 = vrot.lane.b32.xlu1 %v2562_v9, %s2869_s21  ;;  %v1374_v13 = vpop.f32.mrb[15].mxu1 }
 0x335   : > { %1499 = vrot.lane.b32.xlu0 %v1374_v13, %s2869_s21 }
 0x338   : > { %v2565_v55 = vpop.f32.mrb[16].mxu1 }
 0x339   : > { %1505 = vrot.lane.b32.xlu1 %v2565_v55, %s2869_s21  ;;  %v1384_v43 = vpop.f32.mrb[17].mxu1 }
 0x33a   : > { %1503 = vrot.lane.b32.xlu0 %v1384_v43, %s2869_s21 }
 0x33c   : > { %v2568_v8 = vpop.f32.mrb[18].mxu1 }
 0x33d   : > { %1509 = vrot.lane.b32.xlu1 %v2568_v8, %s2869_s21  ;;  %v1394_v52 = vpop.f32.mrb[19].mxu1 }
 0x33e   : > { %1507 = vrot.lane.b32.xlu0 %v1394_v52, %s2869_s21 }
 0x340   : > { %v2571_v17 = vpop.f32.mrb[20].mxu1 }
 0x341   : > { %1513 = vrot.lane.b32.xlu1 %v2571_v17, %s2869_s21  ;;  %v1404_v47 = vpop.f32.mrb[21].mxu1 }
 0x342   : > { %1511 = vrot.lane.b32.xlu0 %v1404_v47, %s2869_s21 }
 0x344   : > { %v2574_v44 = vpop.f32.mrb[22].mxu1 }
 0x345   : > { %1517 = vrot.lane.b32.xlu1 %v2574_v44, %s2869_s21  ;;  %v1414_v5 = vpop.f32.mrb[23].mxu1 }
 0x346   : > { %1515 = vrot.lane.b32.xlu0 %v1414_v5, %s2869_s21 }
 0x349   : > { %1457 = vrot.lane.b32.xlu1 %v2529_v22, %s2869_s21 }
 0x34a   : > { %1455 = vrot.lane.b32.xlu0 %v1264_v11, %s2869_s21 }
 0x34d   : > { %1777 = vrot.lane.b32.xlu1 %v2529_v22, %s2870_s16 }
 0x34e   : > { %1775 = vrot.lane.b32.xlu0 %v1264_v11, %s2870_s16 }
 0x351   : > { %1461 = vrot.lane.b32.xlu1 %v2532_v2, %s2869_s21 }
 0x352   : > { %1459 = vrot.lane.b32.xlu0 %v1274_v58, %s2869_s21 }
 0x355   : > { %1781 = vrot.lane.b32.xlu1 %v2532_v2, %s2870_s16 }
 0x356   : > { %1779 = vrot.lane.b32.xlu0 %v1274_v58, %s2870_s16 }
 0x359   : > { %1465 = vrot.lane.b32.xlu1 %v2535_v12, %s2869_s21 }
 0x35a   : > { %1463 = vrot.lane.b32.xlu0 %v1284_v49, %s2869_s21 }
 0x35d   : > { %1469 = vrot.lane.b32.xlu1 %v2538_v16, %s2869_s21 }
 0x35e   : > { %1783 = vrot.lane.b32.xlu0 %v1284_v49, %s2870_s16 }
 0x361   : > { %1785 = vrot.lane.b32.xlu1 %v2535_v12, %s2870_s16 }
 0x362   : > { %1819 = vrot.lane.b32.xlu0 %v1374_v13, %s2870_s16 }
 0x365   : > { %1821 = vrot.lane.b32.xlu1 %v2562_v9, %s2870_s16 }
 0x366   : > { %1823 = vrot.lane.b32.xlu0 %v1384_v43, %s2870_s16 }
 0x369   : > { %1825 = vrot.lane.b32.xlu1 %v2565_v55, %s2870_s16 }
 0x36a   : > { %1791 = vrot.lane.b32.xlu0 %v3430_v40, %s2870_s16 }
 0x36d   : > { %1793 = vrot.lane.b32.xlu1 %v3424_v46, %s2870_s16 }
 0x36e   : > { %v1474_v2 = vpop.permute.xlu1 %1473  ;;  %1827 = vrot.lane.b32.xlu0 %v1394_v52, %s2870_s16 }
 0x36f   : > { %v3517_v49 = vadd.f32 %v3390_v56, %v1474_v2  ;;  %v1472_v12 = vpop.permute.xlu0 %1471 }
 0x370   : > { %v3520_v11 = vadd.f32 %v1472_v12, %v3392_v3 }
 0x371   : > { %1829 = vrot.lane.b32.xlu1 %v2568_v8, %s2870_s16 }
 0x372   : > { %1795 = vrot.lane.b32.xlu0 %v3442_v28, %s2870_s16 }
 0x375   : > { %1797 = vrot.lane.b32.xlu1 %v3436_v34, %s2870_s16 }
 0x376   : > { %v1478_v9 = vpop.permute.xlu1 %1477  ;;  %1831 = vrot.lane.b32.xlu0 %v1404_v47, %s2870_s16 }
 0x377   : > { %v3529_v40 = vadd.f32 %v3394_v10, %v1478_v9  ;;  %v1476_v43 = vpop.permute.xlu0 %1475 }
 0x378   : > { %v3532_v46 = vadd.f32 %v1476_v43, %v3396_v14 }
 0x379   : > { %1789 = vrot.lane.b32.xlu1 %v2538_v16, %s2870_s16 }
 0x37a   : > { %1799 = vrot.lane.b32.xlu0 %v3454_v24, %s2870_s16 }
 0x37d   : > { %1833 = vrot.lane.b32.xlu1 %v2571_v17, %s2870_s16 }
 0x37e   : > { %v1482_v8 = vpop.permute.xlu1 %1481  ;;  %1835 = vrot.lane.b32.xlu0 %v1414_v5, %s2870_s16 }
 0x37f   : > { %v3540_v28 = vadd.f32 %v3398_v18, %v1482_v8  ;;  %v1480_v34 = vpop.permute.xlu0 %1479 }
 0x380   : > { %v3543_v22 = vadd.f32 %v1480_v34, %v3400_v19 }
 0x381   : > { %1801 = vrot.lane.b32.xlu1 %v3448_v53, %s2870_s16 }
 0x382   : > { %1803 = vrot.lane.b32.xlu0 %v3466_v20, %s2870_s16 }
 0x385   : > { %1837 = vrot.lane.b32.xlu1 %v2574_v44, %s2870_s16 }
 0x386   : > { %v1486_v24 = vpop.permute.xlu1 %1485  ;;  %1467 = vrot.lane.b32.xlu0 %v3482_v48, %s2869_s21 }
 0x387   : > { %v3553_v5 = vadd.f32 %v3402_v23, %v1486_v24  ;;  %v1484_v47 = vpop.permute.xlu0 %1483 }
 0x388   : > { %v3556_v58 = vadd.f32 %v1484_v47, %v3404_v30 }
 0x389   : > { %1805 = vrot.lane.b32.xlu1 %v3460_v21, %s2870_s16 }
 0x38a   : > { %1787 = vrot.lane.b32.xlu0 %v3482_v48, %s2870_s16 }
 0x38e   : > { %v1490_v20 = vpop.permute.xlu1 %1489 }
 0x38f   : > { %v1568_v44 = vadd.f32 %v3406_v7, %v1490_v20  ;;  %v1488_v53 = vpop.permute.xlu0 %1487 }
 0x390   : > { %v1567_v56 = vadd.f32 %v1488_v53, %v3408_v54 }
 0x391   : > { %v2286_v3 = vmul.f32 -1.442695, %v1568_v44 }
 0x392   : > { %v2285_v10 = vmul.f32 -1.442695, %v1567_v56  ;;  %v1810_v14 = vpop.permute.xlu1 %1809 }
 0x393   : > { %2730 = vpow2.f32 %v2286_v3  ;;  %v1808_v18 = vpop.permute.xlu0 %1807  ;;  %v2278_v3 = vmul.f32 -1.442695, %v3517_v49 }
 0x394   : > { %2732 = vpow2.f32 %v2285_v10 }
 0x396   : > { %v1494_v19 = vpop.permute.xlu1 %1493 }
 0x397   : > { %v1570_v23 = vadd.f32 %v3410_v42, %v1494_v19  ;;  %v1492_v30 = vpop.permute.xlu0 %1491  ;;  %v2277_v19 = vmul.f32 -1.442695, %v3520_v11 }
 0x398   : > { %v1569_v21 = vadd.f32 %v1492_v30, %v3412_v29 }
 0x399   : > { %v2288_v16 = vmul.f32 -1.442695, %v1570_v23 }
 0x39a   : > { %v2287_v48 = vmul.f32 -1.442695, %v1569_v21  ;;  %v1814_v13 = vpop.permute.xlu1 %1813 }
 0x39b   : > { %2734 = vpow2.f32 %v2288_v16  ;;  %v1812_v7 = vpop.permute.xlu0 %1811 }
 0x39c   : > { %2736 = vpow2.f32 %v2287_v48  ;;  %v3864_v48 = vpack.i.bf16 %v3063_v60, %v3151_v25  ;;  %v3865_v60 = vpack.i.bf16 %v3066_v61, %v3170_v32  ;;  %v3866_v61 = vpack.i.bf16 %v3075_v0, %v3167_v31 }
 0x39d   : > { %v2731_v55 = vpop.eup %2730 }
 0x39e   : > { %v2733_v54 = vpop.eup %2732  ;;  %v1696_v52 = vadd.f32 1.0, %v2731_v55  ;;  %v1498_v17 = vpop.permute.xlu1 %1497 }
 0x39f   : > { %v1695_v2 = vadd.f32 1.0, %v2733_v54  ;;  %v1572_v12 = vadd.f32 %v3414_v15, %v1498_v17  ;;  %v1496_v9 = vpop.permute.xlu0 %1495  ;;  %v3863_v15 = vpack.i.bf16 %v3056_v57, %v3154_v26 }
 0x3a0   : > { %2738 = vrcp.f32 %v1696_v52  ;;  %v1571_v42 = vadd.f32 %v1496_v9, %v3416_v6 }
 0x3a1   : > { %2740 = vrcp.f32 %v1695_v2  ;;  %v2290_v43 = vmul.f32 -1.442695, %v1572_v12 }
 0x3a2   : > { %v2289_v29 = vmul.f32 -1.442695, %v1571_v42  ;;  %v3568_v8 = vpop.permute.xlu1 %1817 }
 0x3a3   : > { %2742 = vpow2.f32 %v2290_v43  ;;  %v3570_v34 = vpop.permute.xlu0 %1815 }
 0x3a4   : > { %2744 = vpow2.f32 %v2289_v29 }
 0x3a5   : > { %v2735_v24 = vpop.eup %2734 }
 0x3a6   : > { %v2737_v47 = vpop.eup %2736  ;;  %v1698_v20 = vadd.f32 1.0, %v2735_v24  ;;  %v1502_v44 = vpop.permute.xlu1 %1501 }
 0x3a7   : > { %v1697_v53 = vadd.f32 1.0, %v2737_v47  ;;  %v1500_v56 = vpop.permute.xlu0 %1499 }
 0x3a8   : > { %2746 = vrcp.f32 %v1698_v20  ;;  %2659 = vxpose.xlu0.b32.start [1/16] (narrow) %v3863_v15, 64 }
 0x3a9   : > { %2748 = vrcp.f32 %v1697_v53 }
 0x3aa   : > { %v2739_v6 = vpop.eup %2738  ;;  %2750 = vpow2.f32 %v2278_v3 }
 0x3ab   : > { %v2741_v10 = vpop.eup %2740  ;;  %v1888_v23 = vmul.f32 %v2739_v6, %v1810_v14  ;;  %v1506_v30 = vpop.permute.xlu1 %1505  ;;  %2752 = vpow2.f32 %v2277_v19  ;;  %v1574_v14 = vadd.f32 %v3418_v59, %v1502_v44  ;;  %v2279_v6 = vmul.f32 -1.442695, %v3532_v46 }
 0x3ac   : > { %v1887_v21 = vmul.f32 %v2741_v10, %v1808_v18  ;;  %v1576_v16 = vadd.f32 %v3422_v45, %v1506_v30  ;;  %2661 = vxpose.xlu0.b32.cont [2/16] (narrow) %v3864_v48, 64  ;;  %v1504_v55 = vpop.permute.xlu0 %1503  ;;  %v3870_v30 = vld [vmem:[#allocation14_spill] sm:$0xff] }
 0x3ad   : > { %v2743_v54 = vpop.eup %2742  ;;  %v1575_v57 = vadd.f32 %v1504_v55, %v3426_v39  ;;  %v1573_v39 = vadd.f32 %v1500_v56, %v3420_v51  ;;  %v2292_v59 = vmul.f32 -1.442695, %v1574_v14  ;;  %v2280_v56 = vmul.f32 -1.442695, %v3529_v40 }
 0x3ae   : > { %v2745_v26 = vpop.eup %2744  ;;  %v2599_v52 = vpack.c.bf16 %v1888_v23, %v1887_v21  ;;  %v1700_v49 = vadd.f32 1.0, %v2743_v54  ;;  %v2294_v47 = vmul.f32 -1.442695, %v1576_v16  ;;  %v3869_v23 = vld [vmem:[#allocation3_spill] sm:$0xff]  ;;  %v2282_v55 = vmul.f32 -1.442695, %v3540_v28 }
 0x3af   : > { %v1699_v17 = vadd.f32 1.0, %v2745_v26  ;;  %v1510_v11 = vpop.permute.xlu1 %1509  ;;  %v2291_v29 = vmul.f32 -1.442695, %v1573_v39  ;;  %v2293_v44 = vmul.f32 -1.442695, %v1575_v57  ;;  %v3872_v26 = vld [vmem:[#allocation23_spill] sm:$0xff] }
 0x3b0   : > { %2754 = vrcp.f32 %v1700_v49  ;;  %v1578_v45 = vadd.f32 %v3434_v33, %v1510_v11  ;;  %2663 = vxpose.xlu0.b32.cont [3/16] (narrow) %v3865_v60, 64  ;;  %2600 = vmatprep.subr.bf16.mxu1 %v2599_v52  ;;  %v1508_v25 = vpop.permute.xlu0 %1507  ;;  %v2281_v57 = vmul.f32 -1.442695, %v3543_v22  ;;  %v3873_v49 = vld [vmem:[#allocation4_spill] sm:$0xff] }
 0x3b1   : > { %2756 = vrcp.f32 %v1699_v17  ;;  %v1577_v18 = vadd.f32 %v1508_v25, %v3438_v27  ;;  %v3874_v17 = vld [vmem:[#allocation13_spill] sm:$0xff] }
 0x3b2   : > { %v2747_v2 = vpop.eup %2746  ;;  %2758 = vpow2.f32 %v2292_v59  ;;  %v2296_v21 = vmul.f32 -1.442695, %v1578_v45  ;;  %v3875_v11 = vpack.i.bf16 %v3873_v49, %v3874_v17  ;;  %v3876_v45 = vld [vmem:[#allocation24_spill] sm:$0xff]  ;;  %v3878_v59 = vld [vmem:[#allocation15_spill] sm:$0xff] }
 0x3b3   : > { %v2749_v12 = vpop.eup %2748  ;;  %v3589_v9 = vmul.f32 %v2747_v2, %v1814_v13  ;;  %v1514_v42 = vpop.permute.xlu1 %1513  ;;  %2760 = vpow2.f32 %v2291_v29  ;;  %v2295_v16 = vmul.f32 -1.442695, %v1577_v18 }
 0x3b4   : > { %v3591_v43 = vmul.f32 %v2749_v12, %v1812_v7  ;;  %v3594_v33 = vadd.f32 %v3446_v62, %v1514_v42  ;;  %2665 = vxpose.xlu0.b32.cont [4/16] (narrow) %v3866_v61, 64  ;;  %v1512_v32 = vpop.permute.xlu0 %1511  ;;  %v2751_v24 = vpop.eup %2750  ;;  %v3867_v62 = vpack.i.bf16 %v3078_v1, %v3186_v38  ;;  %2762 = vpow2.f32 %v2294_v47  ;;  %v3877_v42 = vld [vmem:[#allocation5_spill] sm:$0xff] }
 0x3b5   : > { %v3600_v51 = vadd.f32 %v1512_v32, %v3450_v63  ;;  %v2753_v31 = vpop.eup %2752  ;;  %v1688_v10 = vadd.f32 1.0, %v2751_v24  ;;  %2764 = vpow2.f32 %v2293_v44  ;;  %v3879_v61 = vpack.i.bf16 %v3877_v42, %v3878_v59  ;;  %v3880_v44 = vld [vmem:[#allocation25_spill] sm:$0xff] }
 0x3b6   : > { %v2603_v27 = vpack.c.bf16 %v3589_v9, %v3591_v43  ;;  %v1687_v19 = vadd.f32 1.0, %v2753_v31  ;;  %2766 = vpow2.f32 %v2280_v56  ;;  %v3881_v56 = vld [vmem:[#allocation6_spill] sm:$0xff]  ;;  %v3900_v9 = vld [vmem:[#allocation12_spill] sm:$0xff] }
 0x3b7   : > { %v1518_v13 = vpop.permute.xlu1 %1517  ;;  %2768 = vpow2.f32 %v2279_v6  ;;  %v3901_v43 = vld [vmem:[#allocation22_spill] sm:$0xff] }
 0x3b8   : > { %v3605_v7 = vadd.f32 %v3458_v50, %v1518_v13  ;;  %2667 = vxpose.xlu0.b32.cont [5/16] (narrow) %v3867_v62, 64  ;;  %v1516_v0 = vpop.permute.xlu0 %1515  ;;  %2770 = vrcp.f32 %v1688_v10  ;;  %v2298_v13 = vmul.f32 -1.442695, %v3594_v33  ;;  %v3884_v33 = vld [vmem:[#allocation26_spill] sm:$0xff] }
 0x3b9   : > { %v3611_v63 = vadd.f32 %v1516_v0, %v3462_v36  ;;  %v3868_v36 = vpack.i.bf16 %v3087_v4, %v3183_v37  ;;  %v3871_v4 = vpack.i.bf16 %v3869_v23, %v3870_v30  ;;  %2772 = vrcp.f32 %v1687_v19 }
 0x3ba   : > { %v2755_v20 = vpop.eup %2754  ;;  %v2300_v42 = vmul.f32 -1.442695, %v3605_v7 }
 0x3bb   : > { %v2757_v53 = vpop.eup %2756  ;;  %v3615_v15 = vmul.f32 %v2755_v20, %v3568_v8  ;;  %v1458_v50 = vpop.permute.xlu1 %1457 }
 0x3bc   : > { %v3619_v1 = vmul.f32 %v2757_v53, %v3570_v34  ;;  %v1552_v38 = vadd.f32 %v3374_v35, %v1458_v50  ;;  %2669 = vxpose.xlu0.b32.cont [6/16] (narrow) %v3868_v36, 64  ;;  %v1456_v3 = vpop.permute.xlu0 %1455  ;;  %v3882_v50 = vld [vmem:[#allocation16_spill] sm:$0xff] }
 0x3bd   : > { %v1551_v40 = vadd.f32 %v1456_v3, %v3376_v41  ;;  %v2759_v41 = vpop.eup %2758  ;;  %v3883_v6 = vpack.i.bf16 %v3881_v56, %v3882_v50  ;;  %v2284_v50 = vmul.f32 -1.442695, %v3553_v5 }
 0x3be   : > { %v2607_v8 = vpack.c.bf16 %v3615_v15, %v3619_v1  ;;  %v2270_v46 = vmul.f32 -1.442695, %v1552_v38  ;;  %v2761_v48 = vpop.eup %2760  ;;  %v1702_v60 = vadd.f32 1.0, %v2759_v41  ;;  %v3885_v41 = vld [vmem:[#allocation7_spill] sm:$0xff] }
 0x3bf   : > { %v3628_v34 = vpop.permute.xlu1 %1777  ;;  %v2269_v35 = vmul.f32 -1.442695, %v1551_v40  ;;  %v1701_v39 = vadd.f32 1.0, %v2761_v48  ;;  %v2763_v18 = vpop.eup %2762  ;;  %v3903_v15 = vld [vmem:[#allocation27_spill] sm:$0xff] }
 0x3c0   : > { %2671 = vxpose.xlu0.b32.cont [7/16] (narrow) %v3871_v4, 64  ;;  %v3633_v37 = vpop.permute.xlu0 %1775  ;;  %2774 = vpow2.f32 %v2270_v46  ;;  %v2765_v22 = vpop.eup %2764  ;;  %v1704_v62 = vadd.f32 1.0, %v2763_v18 }
 0x3c1   : > { %2776 = vpow2.f32 %v2269_v35  ;;  %v2767_v29 = vpop.eup %2766  ;;  %v1703_v31 = vadd.f32 1.0, %v2765_v22 }
 0x3c2   : > { %2778 = vpow2.f32 %v2296_v21  ;;  %v2769_v24 = vpop.eup %2768  ;;  %v2297_v21 = vmul.f32 -1.442695, %v3600_v51 }
 0x3c3   : > { %v1462_v54 = vpop.permute.xlu1 %1461  ;;  %2780 = vpow2.f32 %v2295_v16  ;;  %v3650_v0 = vpop.eup %2770  ;;  %v3886_v16 = vld [vmem:[#allocation17_spill] sm:$0xff] }
 0x3c4   : > { %v1554_v52 = vadd.f32 %v3872_v26, %v1462_v54  ;;  %2673 = vxpose.xlu0.b32.cont [8/16] (narrow) %v3875_v11, 64  ;;  %v1460_v14 = vpop.permute.xlu0 %1459  ;;  %2782 = vpow2.f32 %v2282_v55  ;;  %v3652_v20 = vpop.eup %2772  ;;  %v3887_v48 = vpack.i.bf16 %v3885_v41, %v3886_v16 }
 0x3c5   : > { %v1553_v25 = vadd.f32 %v1460_v14, %v3876_v45  ;;  %2784 = vpow2.f32 %v2281_v57  ;;  %v1690_v57 = vadd.f32 1.0, %v2767_v29  ;;  %v3888_v14 = vld [vmem:[#allocation8_spill] sm:$0xff] }
 0x3c6   : > { %v2272_v28 = vmul.f32 -1.442695, %v1554_v52  ;;  %2786 = vrcp.f32 %v1702_v60  ;;  %v3889_v60 = vld [vmem:[#allocation18_spill] sm:$0xff] }
 0x3c7   : > { %v3642_v2 = vpop.permute.xlu1 %1781  ;;  %v2271_v12 = vmul.f32 -1.442695, %v1553_v25  ;;  %2788 = vrcp.f32 %v1701_v39  ;;  %v3890_v45 = vpack.i.bf16 %v3888_v14, %v3889_v60  ;;  %v3898_v14 = vld [vmem:[#allocation21_spill] sm:$0xff] }
 0x3c8   : > { %2675 = vxpose.xlu0.b32.cont [9/16] (narrow) %v3879_v61, 64  ;;  %v3647_v32 = vpop.permute.xlu0 %1779  ;;  %2790 = vpow2.f32 %v2272_v28  ;;  %v1689_v28 = vadd.f32 1.0, %v2769_v24 }
 0x3c9   : > { %2792 = vpow2.f32 %v2271_v12 }
 0x3ca   : > { %v2775_v36 = vpop.eup %2774  ;;  %2794 = vpow2.f32 %v2298_v13  ;;  %v2299_v13 = vmul.f32 -1.442695, %v3611_v63 }
 0x3cb   : > { %v1466_v47 = vpop.permute.xlu1 %1465  ;;  %v2777_v10 = vpop.eup %2776  ;;  %2796 = vrcp.f32 %v1704_v62  ;;  %v1680_v40 = vadd.f32 1.0, %v2775_v36 }
 0x3cc   : > { %v1556_v53 = vadd.f32 %v3880_v44, %v1466_v47  ;;  %2677 = vxpose.xlu0.b32.cont [10/16] (narrow) %v3883_v6, 64  ;;  %v1464_v38 = vpop.permute.xlu0 %1463  ;;  %v2779_v46 = vpop.eup %2778  ;;  %2798 = vrcp.f32 %v1703_v31  ;;  %v1679_v35 = vadd.f32 1.0, %v2777_v10  ;;  %v3891_v47 = vld [vmem:[#allocation9_spill] sm:$0xff]  ;;  %v3892_v44 = vld [vmem:[#allocation19_spill] sm:$0xff]  ;;  %v2283_v6 = vmul.f32 -1.442695, %v3556_v58 }
 0x3cd   : > { %v1555_v3 = vadd.f32 %v1464_v38, %v3884_v33  ;;  %v2781_v4 = vpop.eup %2780  ;;  %2800 = vrcp.f32 %v1680_v40  ;;  %v1706_v52 = vadd.f32 1.0, %v2779_v46  ;;  %v3895_v46 = vld [vmem:[#allocation20_spill] sm:$0xff] }
 0x3ce   : > { %v2274_v19 = vmul.f32 -1.442695, %v1556_v53  ;;  %v3667_v54 = vpop.eup %2782  ;;  %2802 = vrcp.f32 %v1679_v35  ;;  %v1705_v17 = vadd.f32 1.0, %v2781_v4  ;;  %v3893_v53 = vpack.i.bf16 %v3891_v47, %v3892_v44 }
 0x3cf   : > { %v2273_v23 = vmul.f32 -1.442695, %v1555_v3  ;;  %v3659_v30 = vpop.permute.xlu1 %1469  ;;  %v3669_v26 = vpop.eup %2784 }
 0x3d0   : > { %2679 = vxpose.xlu0.b32.cont [11/16] (narrow) %v3887_v48, 64  ;;  %v3665_v55 = vpop.permute.xlu0 %1783  ;;  %2804 = vpow2.f32 %v2274_v19  ;;  %v2787_v49 = vpop.eup %2786  ;;  %v3894_v19 = vld [vmem:[#allocation10_spill] sm:$0xff]  ;;  %v1691_v44 = vadd.f32 1.0, %v3669_v26  ;;  %v1558_v1 = vadd.f32 %v3903_v15, %v3659_v30 }
 0x3d1   : > { %2806 = vpow2.f32 %v2273_v23  ;;  %v2789_v51 = vpop.eup %2788  ;;  %v3896_v35 = vpack.i.bf16 %v3894_v19, %v3895_v46 }
 0x3d2   : > { %2808 = vpow2.f32 %v2297_v21  ;;  %v2791_v39 = vpop.eup %2790 }
 0x3d3   : > { %v3671_v11 = vpop.permute.xlu1 %1785  ;;  %2810 = vrcp.f32 %v1690_v57  ;;  %v2793_v18 = vpop.eup %2792  ;;  %v1682_v22 = vadd.f32 1.0, %v2791_v39 }
 0x3d4   : > { %2681 = vxpose.xlu0.b32.cont [12/16] (narrow) %v3890_v45, 64  ;;  %v1820_v25 = vpop.permute.xlu0 %1819  ;;  %2812 = vrcp.f32 %v1706_v52  ;;  %v2795_v12 = vpop.eup %2794  ;;  %v1681_v59 = vadd.f32 1.0, %v2793_v18 }
 0x3d5   : > { %2814 = vrcp.f32 %v1705_v17  ;;  %v2797_v29 = vpop.eup %2796  ;;  %v3678_v62 = vmul.f32 %v2789_v51, %v1820_v25  ;;  %v1708_v52 = vadd.f32 1.0, %v2795_v12  ;;  %v3897_v51 = vld [vmem:[#allocation11_spill] sm:$0xff] }
 0x3d6   : > { %2816 = vrcp.f32 %v1682_v22  ;;  %v2799_v56 = vpop.eup %2798  ;;  %v3899_v60 = vpack.i.bf16 %v3897_v51, %v3898_v14  ;;  %v1692_v22 = vadd.f32 1.0, %v3667_v54 }
 0x3d7   : > { %v1822_v61 = vpop.permute.xlu1 %1821  ;;  %2818 = vrcp.f32 %v1681_v59  ;;  %v2801_v7 = vpop.eup %2800 }
 0x3d8   : > { %v3680_v31 = vmul.f32 %v2787_v49, %v1822_v61  ;;  %2683 = vxpose.xlu0.b32.cont [13/16] (narrow) %v3893_v53, 64  ;;  %v1824_v24 = vpop.permute.xlu0 %1823  ;;  %2820 = vrcp.f32 %v1689_v28  ;;  %v2803_v38 = vpop.eup %2802  ;;  %v1872_v36 = vmul.f32 %v2801_v7, %v3628_v34 }
 0x3d9   : > { %2822 = vpow2.f32 %v2300_v42  ;;  %v1871_v10 = vmul.f32 %v2803_v38, %v3633_v37  ;;  %v3691_v40 = vmul.f32 %v2799_v56, %v1824_v24 }
 0x3da   : > { %v2611_v63 = vpack.c.bf16 %v3680_v31, %v3678_v62  ;;  %v2805_v3 = vpop.eup %2804  ;;  %2824 = vpow2.f32 %v2299_v13  ;;  %v3904_v31 = vld [vmem:[#allocation28_spill] sm:$0xff] }
 0x3db   : > { %v1826_v33 = vpop.permute.xlu1 %1825  ;;  %v2807_v23 = vpop.eup %2806  ;;  %2826 = vpow2.f32 %v2284_v50  ;;  %v1684_v4 = vadd.f32 1.0, %v2805_v3  ;;  %v2601_v34 = vpack.c.bf16 %v1872_v36, %v1871_v10 }
 0x3dc   : > { %v3693_v5 = vmul.f32 %v2797_v29, %v1826_v33  ;;  %2685 = vxpose.xlu0.b32.cont [14/16] (narrow) %v3896_v35, 64  ;;  %v1792_v58 = vpop.permute.xlu0 %1791  ;;  %v2809_v21 = vpop.eup %2808  ;;  %2828 = vpow2.f32 %v2283_v6  ;;  %v1683_v41 = vadd.f32 1.0, %v2807_v23 }
 0x3dd   : > { %v2811_v37 = vpop.eup %2810  ;;  %2830 = vrcp.f32 %v1684_v4  ;;  %v3701_v49 = vmul.f32 %v3652_v20, %v1792_v58  ;;  %2602 = vmatpush3.bf16.msra.mxu1 %v2601_v34  ;;  %v1707_v39 = vadd.f32 1.0, %v2809_v21 }
 0x3de   : > { %v2615_v16 = vpack.c.bf16 %v3693_v5, %v3691_v40  ;;  %v2813_v57 = vpop.eup %2812  ;;  %2832 = vrcp.f32 %v1683_v41  ;;  %2604 = vmatprep.subr.bf16.mxu1 %v2603_v27  ;;  %v3902_v27 = vpack.i.bf16 %v3900_v9, %v3901_v43 }
 0x3df   : > { %v1794_v48 = vpop.permute.xlu1 %1793  ;;  %v2815_v25 = vpop.eup %2814  ;;  %2834 = vrcp.f32 %v1708_v52  ;;  %v2276_v52 = vmul.f32 -1.442695, %v1558_v1 }
 0x3e0   : > { %v3704_v17 = vmul.f32 %v3650_v0, %v1794_v48  ;;  %2687 = vxpose.xlu0.b32.cont [15/16] (narrow) %v3899_v60, 64  ;;  %v1828_v45 = vpop.permute.xlu0 %1827  ;;  %v2817_v18 = vpop.eup %2816  ;;  %2836 = vrcp.f32 %v1707_v39 }
 0x3e1   : > { %v2819_v28 = vpop.eup %2818  ;;  %v1874_v0 = vmul.f32 %v2817_v18, %v3642_v2  ;;  %v3717_v61 = vmul.f32 %v2815_v25, %v1828_v45  ;;  %2838 = vrcp.f32 %v1692_v22 }
 0x3e2   : > { %v2617_v20 = vpack.c.bf16 %v3704_v17, %v3701_v49  ;;  %v2821_v42 = vpop.eup %2820  ;;  %v1873_v59 = vmul.f32 %v2819_v28, %v3647_v32  ;;  %2840 = vrcp.f32 %v1691_v44 }
 0x3e3   : > { %v1830_v12 = vpop.permute.xlu1 %1829  ;;  %v2823_v47 = vpop.eup %2822 }
 0x3e4   : > { %v3719_v29 = vmul.f32 %v2813_v57, %v1830_v12  ;;  %2689 = vxpose.xlu0.b32.end [16/16] (narrow) %v3902_v27, 64  ;;  %v1796_v13 = vpop.permute.xlu0 %1795  ;;  %v2825_v54 = vpop.eup %2824  ;;  %v2605_v2 = vpack.c.bf16 %v1874_v0, %v1873_v59  ;;  %v1710_v50 = vadd.f32 1.0, %v2823_v47 }
 0x3e5   : > { %v2827_v24 = vpop.eup %2826  ;;  %v3727_v7 = vmul.f32 %v2821_v42, %v1796_v13  ;;  %v1709_v26 = vadd.f32 1.0, %v2825_v54 }
 0x3e6   : > { %v2619_v53 = vpack.c.bf16 %v3719_v29, %v3717_v61  ;;  %v2829_v56 = vpop.eup %2828  ;;  %2606 = vmatpush3.bf16.msra.mxu1 %v2605_v2  ;;  %v1694_v35 = vadd.f32 1.0, %v2827_v24  ;;  %2842 = vrcp.f32 %v1710_v50 }
 0x3e7   : > { %v1798_v32 = vpop.permute.xlu1 %1797  ;;  %v2831_v36 = vpop.eup %2830  ;;  %2608 = vmatprep.subr.bf16.mxu1 %v2607_v8  ;;  %v1693_v23 = vadd.f32 1.0, %v2829_v56  ;;  %2844 = vrcp.f32 %v1709_v26 }
 0x3e8   : > { %v3729_v6 = vmul.f32 %v2811_v37, %v1798_v32  ;;  %v1832_v38 = vpop.permute.xlu0 %1831  ;;  %v2833_v33 = vpop.eup %2832  ;;  %v1876_v3 = vmul.f32 %v2831_v36, %v3671_v11  ;;  %2846 = vrcp.f32 %v1694_v35 }
 0x3e9   : > { %v1875_v19 = vmul.f32 %v2833_v33, %v3665_v55  ;;  %v2835_v21 = vpop.eup %2834  ;;  %2848 = vrcp.f32 %v1693_v23 }
 0x3ea   : > { %v2621_v10 = vpack.c.bf16 %v3729_v6, %v3727_v7  ;;  %v2837_v34 = vpop.eup %2836  ;;  %2850 = vpow2.f32 %v2276_v52 }
 0x3eb   : > { %v1790_v46 = vpop.permute.xlu1 %1789  ;;  %v2609_v4 = vpack.c.bf16 %v1876_v3, %v1875_v19  ;;  %v1899_v11 = vmul.f32 %v2837_v34, %v1832_v38  ;;  %v2839_v37 = vpop.eup %2838 }
 0x3ec   : > { %v1800_v58 = vpop.permute.xlu0 %1799  ;;  %v2841_v57 = vpop.eup %2840 }
 0x3ed   : > { %2610 = vmatpush3.bf16.msra.mxu1 %v2609_v4  ;;  %v1883_v14 = vmul.f32 %v2841_v57, %v1800_v58  ;;  %v2073_v57 = vld [vmem:[%s3816_s4 + $0x8] sm:$0xff] }
 0x3ee   : > { %2612 = vmatprep.subr.bf16.mxu1 %v2611_v63 }
 0x3ef   : > { %v1834_v8 = vpop.permute.xlu1 %1833 }
 0x3f0   : > { %v1900_v55 = vmul.f32 %v2835_v21, %v1834_v8  ;;  %v1836_v41 = vpop.permute.xlu0 %1835  ;;  %v2843_v30 = vpop.eup %2842 }
 0x3f1   : > { %v2845_v39 = vpop.eup %2844 }
 0x3f2   : > { %v2623_v48 = vpack.c.bf16 %v1900_v55, %v1899_v11  ;;  %v1901_v28 = vmul.f32 %v2845_v39, %v1836_v41  ;;  %v2847_v0 = vpop.eup %2846  ;;  %v2072_v11 = vld [vmem:[%s3816_s4] sm:$0xff] }
 0x3f3   : > { %v1802_v51 = vpop.permute.xlu1 %1801  ;;  %v2849_v42 = vpop.eup %2848 }
 0x3f4   : > { %v1884_v60 = vmul.f32 %v2839_v37, %v1802_v51  ;;  %v1804_v45 = vpop.permute.xlu0 %1803  ;;  %v2851_v47 = vpop.eup %2850 }
 0x3f5   : > { %v1885_v43 = vmul.f32 %v2849_v42, %v1804_v45  ;;  %v1686_v44 = vadd.f32 1.0, %v2851_v47  ;;  %v2074_v45 = vld [vmem:[%s3816_s4 + $0x10] sm:$0xff] }
 0x3f6   : > { %v2625_v25 = vpack.c.bf16 %v1884_v60, %v1883_v14 }
 0x3f7   : > { %v1838_v18 = vpop.permute.xlu1 %1837 }
 0x3f8   : > { %v1902_v22 = vmul.f32 %v2843_v30, %v1838_v18  ;;  %v1468_v62 = vpop.permute.xlu0 %1467 }
 0x3f9   : > { %v1557_v63 = vadd.f32 %v1468_v62, %v3904_v31 }
 0x3fa   : > { %v2627_v12 = vpack.c.bf16 %v1902_v22, %v1901_v28  ;;  %v2075_v28 = vld [vmem:[%s3816_s4 + $0x18] sm:$0xff] }
 0x3fb   : > { %v2275_v59 = vmul.f32 -1.442695, %v1557_v63  ;;  %v1806_v9 = vpop.permute.xlu1 %1805 }
 0x3fc   : > { %v1886_v27 = vmul.f32 %v2847_v0, %v1806_v9  ;;  %v1788_v56 = vpop.permute.xlu0 %1787  ;;  %v2076_v0 = vld [vmem:[%s3816_s4 + $0x20] sm:$0xff] }
 0x3fd   : > { %2852 = vpow2.f32 %v2275_v59 }
 0x3fe   : > { %v2629_v13 = vpack.c.bf16 %v1886_v27, %v1885_v43  ;;  %2854 = vrcp.f32 %v1686_v44  ;;  %v2077_v43 = vld [vmem:[%s3816_s4 + $0x28] sm:$0xff] }
 0x407   : > { %v2853_v54 = vpop.eup %2852 }
 0x408   : > { %v1685_v2 = vadd.f32 1.0, %v2853_v54  ;;  %v2855_v24 = vpop.eup %2854  ;;  %v2078_v54 = vld [vmem:[%s3816_s4 + $0x30] sm:$0xff] }
 0x409   : > { %v1878_v50 = vmul.f32 %v2855_v24, %v1790_v46 }
 0x40a   : > { %2856 = vrcp.f32 %v1685_v2 }
 0x414   : > { %v2857_v32 = vpop.eup %2856 }
 0x415   : > { %v1877_v7 = vmul.f32 %v2857_v32, %v1788_v56 }
 0x417   : > { %v2613_v6 = vpack.c.bf16 %v1878_v50, %v1877_v7  ;;  %v2079_v50 = vld [vmem:[%s3816_s4 + $0x38] sm:$0xff] }
 0x419   : > { %2614 = vmatpush3.bf16.msra.mxu1 %v2613_v6 }
 0x41a   : > { %2616 = vmatprep.subr.bf16.mxu1 %v2615_v16 }
 0x41d   : > { %2618 = vmatpush3.bf16.msra.mxu1 %v2617_v20 }
 0x41e   : > { %2620 = vmatprep.subr.bf16.mxu1 %v2619_v53 }
 0x421   : > { %2622 = vmatpush3.bf16.msra.mxu1 %v2621_v10 }
 0x422   : > { %2624 = vmatprep.subr.bf16.mxu1 %v2623_v48 }
 0x425   : > { %2626 = vmatpush3.bf16.msra.mxu1 %v2625_v25 }
 0x426   : > { %2628 = vmatprep.subr.bf16.mxu1 %v2627_v12 }
 0x428   : > { %v2690_v38 = vpop.trf.xlu0 }
 0x429   : > { %2630 = vmatpush3.bf16.msra.mxu1 %v2629_v13  ;;  %v2694_v36 = vunpack.i.h.bf16 %v2690_v38  ;;  %v2691_v26 = vunpack.i.l.bf16 %v2690_v38 }
 0x42b   : > { %2031 = vmatprep.mubr.f32.mxu1 %v2691_v26 }
 0x42c   : > { %v2695_v33 = vpop.trf.xlu0  ;;  %2032 = vmatmul.mubr.f32.vlgmr.msra.gmra.mrb[24].mxu1 %v2694_v36 }
 0x42d   : > { %v2696_v40 = vunpack.i.l.bf16 %v2695_v33  ;;  %v2699_v5 = vunpack.i.h.bf16 %v2695_v33 }
 0x42f   : > { %2036 = vmatprep.mubr.f32.mxu1 %v2696_v40 }
 0x430   : > { %v2700_v16 = vpop.trf.xlu0  ;;  %2037 = vmatmul.mubr.f32.gmra.mrb[26].mxu1 %v2699_v5 }
 0x431   : > { %v2701_v49 = vunpack.i.l.bf16 %v2700_v16  ;;  %v2704_v17 = vunpack.i.h.bf16 %v2700_v16 }
 0x433   : > { %2041 = vmatprep.mubr.f32.mxu1 %v2701_v49 }
 0x434   : > { %v2705_v20 = vpop.trf.xlu0  ;;  %2042 = vmatmul.mubr.f32.gmra.mrb[28].mxu1 %v2704_v17 }
 0x435   : > { %v2706_v61 = vunpack.i.l.bf16 %v2705_v20  ;;  %v2709_v29 = vunpack.i.h.bf16 %v2705_v20 }
 0x437   : > { %2046 = vmatprep.mubr.f32.mxu1 %v2706_v61 }
 0x438   : > { %v2710_v53 = vpop.trf.xlu0  ;;  %2047 = vmatmul.mubr.f32.gmra.mrb[30].mxu1 %v2709_v29 }
 0x439   : > { %v2711_v3 = vunpack.i.l.bf16 %v2710_v53  ;;  %v2714_v10 = vunpack.i.h.bf16 %v2710_v53 }
 0x43b   : > { %2051 = vmatprep.mubr.f32.mxu1 %v2711_v3 }
 0x43c   : > { %v2715_v19 = vpop.trf.xlu0  ;;  %2052 = vmatmul.mubr.f32.gmra.mrb[32].mxu1 %v2714_v10 }
 0x43d   : > { %v2716_v46 = vunpack.i.l.bf16 %v2715_v19  ;;  %v2719_v35 = vunpack.i.h.bf16 %v2715_v19 }
 0x43f   : > { %2056 = vmatprep.mubr.f32.mxu1 %v2716_v46 }
 0x440   : > { %v2720_v58 = vpop.trf.xlu0  ;;  %2057 = vmatmul.mubr.f32.gmra.mrb[34].mxu1 %v2719_v35 }
 0x441   : > { %v2721_v23 = vunpack.i.l.bf16 %v2720_v58  ;;  %v2724_v4 = vunpack.i.h.bf16 %v2720_v58 }
 0x443   : > { %2061 = vmatprep.mubr.f32.mxu1 %v2721_v23 }
 0x444   : > { %v2725_v21 = vpop.trf.xlu0  ;;  %2062 = vmatmul.mubr.f32.gmra.mrb[36].mxu1 %v2724_v4 }
 0x445   : > { %v2729_v34 = vunpack.i.h.bf16 %v2725_v21  ;;  %v2726_v15 = vunpack.i.l.bf16 %v2725_v21 }
 0x447   : > { %2066 = vmatprep.mubr.f32.mxu1 %v2726_v15 }
 0x448   : > { %2067 = vmatmul.mubr.f32.gmra.mrb[38].mxu1 %v2729_v34 }
 0x4ff   : > { %v2419_v1 = vpop.f32.mrb[24].mxu1 }
 0x500   : > { %v2420_v8 = vpop.f32.mrb[25].mxu1 }
 0x501   : > { %v2421_v55 = vadd.f32 %v2420_v8, %v2419_v1 }
 0x503   : > { %v2080_v41 = vadd.f32 %v2421_v55, %v2072_v11  ;;  %v2422_v37 = vpop.f32.mrb[26].mxu1 }
 0x504   : > { %v2423_v48 = vpop.f32.mrb[27].mxu1 }
 0x505   : > { %2089 = vst.msk [vmem:[%s3816_s4] sm:$0xff] %vm2088_vm2, %v2080_v41  ;;  %v2424_v52 = vadd.f32 %v2423_v48, %v2422_v37 }
 0x507   : > { %v2081_v51 = vadd.f32 %v2424_v52, %v2073_v57  ;;  %v2425_v14 = vpop.f32.mrb[28].mxu1 }
 0x508   : > { %v2426_v60 = vpop.f32.mrb[29].mxu1 }
 0x509   : > { %2090 = vst.msk [vmem:[%s3816_s4 + $0x8] sm:$0xff] %vm2088_vm2, %v2081_v51  ;;  %v2427_v30 = vadd.f32 %v2426_v60, %v2425_v14 }
 0x50b   : > { %v2082_v25 = vadd.f32 %v2427_v30, %v2074_v45  ;;  %v2428_v39 = vpop.f32.mrb[30].mxu1 }
 0x50c   : > { %v2429_v18 = vpop.f32.mrb[31].mxu1 }
 0x50d   : > { %2091 = vst.msk [vmem:[%s3816_s4 + $0x10] sm:$0xff] %vm2088_vm2, %v2082_v25  ;;  %v2430_v22 = vadd.f32 %v2429_v18, %v2428_v39 }
 0x50f   : > { %v2083_v62 = vadd.f32 %v2430_v22, %v2075_v28  ;;  %v2431_v31 = vpop.f32.mrb[32].mxu1 }
 0x510   : > { %v2432_v63 = vpop.f32.mrb[33].mxu1 }
 0x511   : > { %2092 = vst.msk [vmem:[%s3816_s4 + $0x18] sm:$0xff] %vm2088_vm2, %v2083_v62  ;;  %v2433_v12 = vadd.f32 %v2432_v63, %v2431_v31 }
 0x513   : > { %v2084_v42 = vadd.f32 %v2433_v12, %v2076_v0  ;;  %v2434_v59 = vpop.f32.mrb[34].mxu1 }
 0x514   : > { %v2435_v9 = vpop.f32.mrb[35].mxu1 }
 0x515   : > { %2093 = vst.msk [vmem:[%s3816_s4 + $0x20] sm:$0xff] %vm2088_vm2, %v2084_v42  ;;  %v2436_v27 = vadd.f32 %v2435_v9, %v2434_v59 }
 0x517   : > { %v2085_v13 = vadd.f32 %v2436_v27, %v2077_v43  ;;  %v2437_v47 = vpop.f32.mrb[36].mxu1 }
 0x518   : > { %v2438_v44 = vpop.f32.mrb[37].mxu1 }
 0x519   : > { %2094 = vst.msk [vmem:[%s3816_s4 + $0x28] sm:$0xff] %vm2088_vm2, %v2085_v13  ;;  %v2439_v2 = vadd.f32 %v2438_v44, %v2437_v47 }
 0x51b   : > { %v2086_v24 = vadd.f32 %v2439_v2, %v2078_v54  ;;  %v2440_v32 = vpop.f32.mrb[38].mxu1 }
 0x51c   : > { %v2441_v56 = vpop.f32.mrb[39].mxu1 }
 0x51d   : > { %2095 = vst.msk [vmem:[%s3816_s4 + $0x30] sm:$0xff] %vm2088_vm2, %v2086_v24  ;;  %v2442_v7 = vadd.f32 %v2441_v56, %v2440_v32 }
 0x51f   : > { %v2087_v6 = vadd.f32 %v2442_v7, %v2079_v50 }
 0x521   : > { %2096 = vst.msk [vmem:[%s3816_s4 + $0x38] sm:$0xff] %vm2088_vm2, %v2087_v6 }
 0x522 PF: > { %s14_s15 = sadd.s32 1, %s2864_s15  }
 0x523   : > { %p11_p5 = scmp.ge.s32.totalorder %s14_s15, 5  }
 0x525   :  { %13 = sbr.rel (!%p11_p5) target bundleno = 1 (0x1), region = 66 }

</bundles_post_ra>
